<compile_context>
chip_gen: v6e
topology: v6e:2x2x1
jax: 0.10.0
libtpu: 0.0.40
codegen_flags: <defaults>
</compile_context>

<pallas_src>
import functools

import jax
import jax.numpy as jnp
import numpy as np
from jax import lax
from jax.experimental import pallas as pl
from jax.experimental.pallas import tpu as pltpu


def _sca_kernel(x_ref, w1_ref, b1_ref, w3_ref, b3_ref, gamma_ref, beta_ref,
                pool_ref, exph_ref, expw_ref, bmean_ref, mask_ref, o_ref, *, w):
    """One grid step: a (C, P) slab with P = Bt * H * W (Bt batches lane-packed)."""
    eps = 1e-5

    x = x_ref[0]                          # (c, P) f32
    P = x.shape[1]
    w1 = w1_ref[...]                      # (c, c)
    b1 = b1_ref[...]                      # (c, 1)
    w3 = w3_ref[...]                      # (c, 9c)   tap-major layout
    b3 = b3_ref[...]                      # (c, 1)
    gamma = gamma_ref[...]                # (c, 1)
    beta = beta_ref[...]                  # (c, 1)
    pool = pool_ref[...]                  # (P, L)  L = Bt*(h+w): [row-mean | col-mean] per batch
    exp_h = exph_ref[...]                 # (L, P)  expand h-part back to spatial
    exp_w = expw_ref[...]                 # (L, P)  expand w-part back to spatial
    bmean = bmean_ref[...]                # (P, P)  per-batch spatial mean (block diag, 1/hw)
    masks = mask_ref[...]                 # (9, P)  3x3 tap validity (0/1)

    def dot(a, b):
        return jnp.dot(a, b, preferred_element_type=jnp.float32)

    def batch_mean(z):                    # per-channel, per-batch spatial mean, broadcast to (c, P)
        return dot(z, bmean)

    def group_norm(z):                    # GroupNorm(num_groups=C): per-channel, per-batch
        mu = batch_mean(z)
        d = z - mu
        var = batch_mean(d * d)
        return d * lax.rsqrt(var + eps) * gamma + beta

    def channel_softmax(z):               # softmax over channels of the per-batch global mean
        m = batch_mean(z)                 # (c, P), constant within each batch block
        m = m - jnp.max(m, axis=0, keepdims=True)
        e = jnp.exp(m)
        return e / jnp.sum(e, axis=0, keepdims=True)

    # ---- coordinate-attention branch: dual adaptive pool + shared 1x1 conv ----
    pooled = dot(x, pool)                                   # (c, L) = [x_h | x_w] per batch
    sig = jax.nn.sigmoid(dot(w1, pooled) + b1)              # (c, L)
    modulated = x * dot(sig, exp_h) * dot(sig, exp_w)       # (c, P)
    x1 = group_norm(modulated)                              # (c, P)
    x11 = channel_softmax(x1)                               # (c, P) (already spatially broadcast)

    # ---- 3x3 conv (padding=1): 9 rolled+masked taps -> single (c,9c)x(9c,P) matmul ----
    taps = []
    for di in (-1, 0, 1):
        for dj in (-1, 0, 1):
            k = (di + 1) * 3 + (dj + 1)
            off = di * w + dj
            if off == 0:
                taps.append(x)
            else:
                rolled = pltpu.roll(x, shift=(-off) % P, axis=1)
                taps.append(rolled * masks[k:k + 1, :])
    stacked = jnp.concatenate(taps, axis=0)                 # (9c, P)
    conv = dot(w3, stacked) + b3                            # (c, P)

    gn_x = group_norm(x)                                    # (c, P)
    s = jax.nn.sigmoid(batch_mean(gn_x))                    # (c, P) per-batch scalar, broadcast
    x12 = conv + s * jax.nn.sigmoid(gn_x)                   # (c, P)
    x21 = channel_softmax(x12)                              # (c, P)

    # weights = x11 @ x12 + x21 @ x22   (x22 == x1)
    weights = jnp.sum(x11 * x12 + x21 * x1, axis=0, keepdims=True)   # (1, P)
    o_ref[0] = (x * jax.nn.sigmoid(weights)).astype(o_ref.dtype)


def _build_constants(h, w, bt):
    """Grid-invariant selector matrices for the lane-packed (C, Bt*H*W) layout."""
    hw = h * w
    P = bt * hw
    L = bt * (h + w)
    q = np.arange(P)
    batch = q // hw
    p = q % hw
    i = p // w
    j = p % w

    pool = np.zeros((P, L), np.float32)                 # x @ pool = [mean over W | mean over H]
    pool[q, batch * (h + w) + i] = 1.0 / w
    pool[q, batch * (h + w) + h + j] = 1.0 / h

    exp_h = np.zeros((L, P), np.float32)                # h-part value of row(i) -> every (i, j)
    exp_h[batch * (h + w) + i, q] = 1.0
    exp_w = np.zeros((L, P), np.float32)                # w-part value of col(j) -> every (i, j)
    exp_w[batch * (h + w) + h + j, q] = 1.0

    bmean = (batch[:, None] == batch[None, :]).astype(np.float32) / hw   # (P, P)

    masks = np.empty((9, P), np.float32)                # zero-padding validity per 3x3 tap
    for di in (-1, 0, 1):
        for dj in (-1, 0, 1):
            k = (di + 1) * 3 + (dj + 1)
            valid = (i + di >= 0) & (i + di < h) & (j + dj >= 0) & (j + dj < w)
            masks[k] = valid.astype(np.float32)
    return pool, exp_h, exp_w, bmean, masks


def spatial_cross_attention(x, params, *, batch_tile=None):
    """x: (b, c, h, w) NCHW float32. Returns (b, c, h, w)."""
    b, c, h, w = x.shape
    hw = h * w

    if batch_tile is None:
        # Pack batches per step but keep >= 2 grid steps when possible so both
        # v7x TensorCores get work (harmless on v5e/v6e).
        grid_steps = 2 if b >= 2 else 1
        batch_tile = pl.cdiv(b, grid_steps)
    bt = int(batch_tile)
    g = pl.cdiv(b, bt)                    # number of grid steps
    b_pad = g * bt
    P = bt * hw
    L = bt * (h + w)

    x_flat = x.reshape(b, c, hw)
    if b_pad != b:
        x_flat = jnp.concatenate(
            [x_flat, jnp.zeros((b_pad - b, c, hw), x.dtype)], axis=0)
    # pack Bt batches along the lane axis: (g, c, Bt*hw)
    x_packed = (x_flat.reshape(g, bt, c, hw)
                .transpose(0, 2, 1, 3)
                .reshape(g, c, P))

    # parameters
    w1 = params["w1"].reshape(c, c)                                  # (c_out, c_in)
    b1 = params["b1"].reshape(c, 1)
    # conv3x3 weight (c_out, c_in, 3, 3) -> (c_out, 9*c_in), tap-major, k=(di+1)*3+(dj+1)
    w3 = jnp.transpose(params["w3"], (0, 2, 3, 1)).reshape(c, 9 * c)
    b3 = params["b3"].reshape(c, 1)
    gamma = params["gamma"].reshape(c, 1)
    beta = params["beta"].reshape(c, 1)

    pool, exp_h, exp_w, bmean, masks = _build_constants(h, w, bt)
    pool = jnp.asarray(pool)
    exp_h = jnp.asarray(exp_h)
    exp_w = jnp.asarray(exp_w)
    bmean = jnp.asarray(bmean)
    masks = jnp.asarray(masks)

    const2d = lambda: pl.BlockSpec(None, None)  # placeholder (not used; explicit specs below)

    kernel = functools.partial(_sca_kernel, w=w)
    out_packed = pl.pallas_call(
        kernel,
        out_shape=jax.ShapeDtypeStruct((g, c, P), x.dtype),
        grid=(g,),
        in_specs=[
            pl.BlockSpec((1, c, P), lambda i: (i, 0, 0)),    # x slab (per grid step)
            pl.BlockSpec((c, c), lambda i: (0, 0)),          # w1
            pl.BlockSpec((c, 1), lambda i: (0, 0)),          # b1
            pl.BlockSpec((c, 9 * c), lambda i: (0, 0)),      # w3 (fused tap layout)
            pl.BlockSpec((c, 1), lambda i: (0, 0)),          # b3
            pl.BlockSpec((c, 1), lambda i: (0, 0)),          # gamma
            pl.BlockSpec((c, 1), lambda i: (0, 0)),          # beta
            pl.BlockSpec((P, L), lambda i: (0, 0)),          # pool selector
            pl.BlockSpec((L, P), lambda i: (0, 0)),          # expand h
            pl.BlockSpec((L, P), lambda i: (0, 0)),          # expand w
            pl.BlockSpec((P, P), lambda i: (0, 0)),          # per-batch block mean
            pl.BlockSpec((9, P), lambda i: (0, 0)),          # 3x3 boundary masks
        ],
        out_specs=pl.BlockSpec((1, c, P), lambda i: (i, 0, 0)),
        compiler_params=pltpu.CompilerParams(dimension_semantics=("parallel",)),
    )(x_packed, w1, b1, w3, b3, gamma, beta, pool, exp_h, exp_w, bmean, masks)

    out = (out_packed.reshape(g, c, bt, hw)
           .transpose(0, 2, 1, 3)
           .reshape(b_pad, c, hw)[:b])
    return out.reshape(b, c, h, w)


def reference(x, params):
    """Pure-JAX reference of the PyTorch forward (for validation)."""
    b, c, h, w = x.shape
    eps = 1e-5
    w1 = params["w1"][:, :, 0, 0]
    b1 = params["b1"]
    w3 = params["w3"]
    b3 = params["b3"]
    gamma = params["gamma"]
    beta = params["beta"]

    def gn(z):
        mu = jnp.mean(z, axis=(2, 3), keepdims=True)
        var = jnp.mean((z - mu) ** 2, axis=(2, 3), keepdims=True)
        return ((z - mu) / jnp.sqrt(var + eps) * gamma[None, :, None, None]
                + beta[None, :, None, None])

    agp = lambda z: jnp.mean(z, axis=(2, 3))

    x_h = jnp.mean(x, axis=3, keepdims=True)                                   # (b,c,h,1)
    x_w = jnp.transpose(jnp.mean(x, axis=2, keepdims=True), (0, 1, 3, 2))      # (b,c,w,1)
    cat = jnp.concatenate([x_h, x_w], axis=2)[..., 0]                          # (b,c,h+w)
    hw_ = jnp.einsum("oc,bcl->bol", w1, cat) + b1[None, :, None]               # (b,c,h+w)
    xh2 = hw_[:, :, :h][..., None]                                             # (b,c,h,1)
    xw2 = hw_[:, :, h:][:, :, None, :]                                         # (b,c,1,w)
    mod = x * jax.nn.sigmoid(xh2) * jax.nn.sigmoid(xw2)
    x1 = gn(mod)
    x11 = jax.nn.softmax(agp(x1), axis=-1)                                     # (b,c)
    x22 = x1.reshape(b, c, h * w)
    x2 = lax.conv_general_dilated(x, w3, window_strides=(1, 1), padding="SAME",
                                  dimension_numbers=("NCHW", "OIHW", "NCHW"))
    x2 = x2 + b3[None, :, None, None]
    gnx = gn(x)
    x12 = x2 + jax.nn.sigmoid(agp(gnx))[:, :, None, None] * jax.nn.sigmoid(gnx)
    x21 = jax.nn.softmax(agp(x12), axis=-1)                                    # (b,c)
    x12f = x12.reshape(b, c, h * w)
    weights = (jnp.einsum("bc,bcp->bp", x11, x12f) +
               jnp.einsum("bc,bcp->bp", x21, x22)).reshape(b, 1, h, w)
    return x * jax.nn.sigmoid(weights)


if __name__ == "__main__":
    b, c, h, w = 2, 4, 16, 16
    key = jax.random.PRNGKey(0)
    ks = jax.random.split(key, 7)
    x = jax.random.normal(ks[0], (b, c, h, w), jnp.float32)
    params = dict(
        w1=0.3 * jax.random.normal(ks[1], (c, c, 1, 1), jnp.float32),
        b1=0.1 * jax.random.normal(ks[2], (c,), jnp.float32),
        w3=0.2 * jax.random.normal(ks[3], (c, c, 3, 3), jnp.float32),
        b3=0.1 * jax.random.normal(ks[4], (c,), jnp.float32),
        gamma=1.0 + 0.1 * jax.random.normal(ks[5], (c,), jnp.float32),
        beta=0.1 * jax.random.normal(ks[6], (c,), jnp.float32),
    )

    ref = jax.block_until_ready(reference(x, params))

    # Default: >=2 grid steps (v7x friendly), one batch per step here.
    out = jax.block_until_ready(spatial_cross_attention(x, params))
    assert out.shape == (b, c, h, w)
    np.testing.assert_allclose(np.asarray(out), np.asarray(ref), rtol=2e-4, atol=2e-4)

    # Fully lane-packed variant (all batches in one grid step) — exercises the
    # batch-packing path recommended for v5e/v6e.
    out2 = jax.block_until_ready(spatial_cross_attention(x, params, batch_tile=b))
    np.testing.assert_allclose(np.asarray(out2), np.asarray(ref), rtol=2e-4, atol=2e-4)

    print("KERNEL_OK")
</pallas_src>

<mosaic_0001>
module attributes {stable_mosaic.version = 11 : i64} {
  func.func @_sca_kernel(%arg0: i32, %arg1: memref<1x4x256xf32, #tpu.memory_space<vmem>>, %arg2: memref<4x4xf32, #tpu.memory_space<vmem>>, %arg3: memref<4x1xf32, #tpu.memory_space<vmem>>, %arg4: memref<4x36xf32, #tpu.memory_space<vmem>>, %arg5: memref<4x1xf32, #tpu.memory_space<vmem>>, %arg6: memref<4x1xf32, #tpu.memory_space<vmem>>, %arg7: memref<4x1xf32, #tpu.memory_space<vmem>>, %arg8: memref<256x32xf32, #tpu.memory_space<vmem>>, %arg9: memref<32x256xf32, #tpu.memory_space<vmem>>, %arg10: memref<32x256xf32, #tpu.memory_space<vmem>>, %arg11: memref<256x256xf32, #tpu.memory_space<vmem>>, %arg12: memref<9x256xf32, #tpu.memory_space<vmem>>, %arg13: memref<1x4x256xf32, #tpu.memory_space<vmem>>) attributes {dimension_semantics = [#tpu.dimension_semantics<parallel>], iteration_bounds = array<i64: 2>, scalar_prefetch = 0 : i64, scratch_operands = 0 : i64, tpu.core_type = #tpu.core_type<tc>, window_params = [{transform_indices = @transform_0, window_bounds = array<i64: 1, 4, 256>}, {pipeline_mode = #tpu.pipeline_mode<synchronous>, transform_indices = @transform_1, window_bounds = array<i64: 4, 4>}, {pipeline_mode = #tpu.pipeline_mode<synchronous>, transform_indices = @transform_2, window_bounds = array<i64: 4, 1>}, {pipeline_mode = #tpu.pipeline_mode<synchronous>, transform_indices = @transform_3, window_bounds = array<i64: 4, 36>}, {pipeline_mode = #tpu.pipeline_mode<synchronous>, transform_indices = @transform_4, window_bounds = array<i64: 4, 1>}, {pipeline_mode = #tpu.pipeline_mode<synchronous>, transform_indices = @transform_5, window_bounds = array<i64: 4, 1>}, {pipeline_mode = #tpu.pipeline_mode<synchronous>, transform_indices = @transform_6, window_bounds = array<i64: 4, 1>}, {pipeline_mode = #tpu.pipeline_mode<synchronous>, transform_indices = @transform_7, window_bounds = array<i64: 256, 32>}, {pipeline_mode = #tpu.pipeline_mode<synchronous>, transform_indices = @transform_8, window_bounds = array<i64: 32, 256>}, {pipeline_mode = #tpu.pipeline_mode<synchronous>, transform_indices = @transform_9, window_bounds = array<i64: 32, 256>}, {pipeline_mode = #tpu.pipeline_mode<synchronous>, transform_indices = @transform_10, window_bounds = array<i64: 256, 256>}, {pipeline_mode = #tpu.pipeline_mode<synchronous>, transform_indices = @transform_11, window_bounds = array<i64: 9, 256>}, {transform_indices = @transform_12, window_bounds = array<i64: 1, 4, 256>}]} {
    %c0 = arith.constant 0 : index
    %c0_0 = arith.constant 0 : index
    %c0_1 = arith.constant 0 : index
    %0 = vector.load %arg1[%c0, %c0_0, %c0_1] : memref<1x4x256xf32, #tpu.memory_space<vmem>>, vector<1x4x256xf32>
    %1 = vector.shape_cast %0 : vector<1x4x256xf32> to vector<4x256xf32>
    %c0_2 = arith.constant 0 : index
    %c0_3 = arith.constant 0 : index
    %2 = vector.load %arg2[%c0_2, %c0_3] : memref<4x4xf32, #tpu.memory_space<vmem>>, vector<4x4xf32>
    %c0_4 = arith.constant 0 : index
    %c0_5 = arith.constant 0 : index
    %3 = vector.load %arg3[%c0_4, %c0_5] : memref<4x1xf32, #tpu.memory_space<vmem>>, vector<4x1xf32>
    %c0_6 = arith.constant 0 : index
    %c0_7 = arith.constant 0 : index
    %4 = vector.load %arg4[%c0_6, %c0_7] : memref<4x36xf32, #tpu.memory_space<vmem>>, vector<4x36xf32>
    %c0_8 = arith.constant 0 : index
    %c0_9 = arith.constant 0 : index
    %5 = vector.load %arg5[%c0_8, %c0_9] : memref<4x1xf32, #tpu.memory_space<vmem>>, vector<4x1xf32>
    %c0_10 = arith.constant 0 : index
    %c0_11 = arith.constant 0 : index
    %6 = vector.load %arg6[%c0_10, %c0_11] : memref<4x1xf32, #tpu.memory_space<vmem>>, vector<4x1xf32>
    %c0_12 = arith.constant 0 : index
    %c0_13 = arith.constant 0 : index
    %7 = vector.load %arg7[%c0_12, %c0_13] : memref<4x1xf32, #tpu.memory_space<vmem>>, vector<4x1xf32>
    %c0_14 = arith.constant 0 : index
    %c0_15 = arith.constant 0 : index
    %8 = vector.load %arg8[%c0_14, %c0_15] : memref<256x32xf32, #tpu.memory_space<vmem>>, vector<256x32xf32>
    %c0_16 = arith.constant 0 : index
    %c0_17 = arith.constant 0 : index
    %9 = vector.load %arg9[%c0_16, %c0_17] : memref<32x256xf32, #tpu.memory_space<vmem>>, vector<32x256xf32>
    %c0_18 = arith.constant 0 : index
    %c0_19 = arith.constant 0 : index
    %10 = vector.load %arg10[%c0_18, %c0_19] : memref<32x256xf32, #tpu.memory_space<vmem>>, vector<32x256xf32>
    %c0_20 = arith.constant 0 : index
    %c0_21 = arith.constant 0 : index
    %11 = vector.load %arg11[%c0_20, %c0_21] : memref<256x256xf32, #tpu.memory_space<vmem>>, vector<256x256xf32>
    %c0_22 = arith.constant 0 : index
    %c0_23 = arith.constant 0 : index
    %12 = vector.load %arg12[%c0_22, %c0_23] : memref<9x256xf32, #tpu.memory_space<vmem>>, vector<9x256xf32>
    %cst = arith.constant dense<0.000000e+00> : vector<4x32xf32>
    %13 = tpu.matmul %1, %8, %cst {dimension_numbers = #tpu.dot_dimension_numbers<[1], [0], [0], [1], [0, 0, 1, 1], [], []>} : vector<4x256xf32>, vector<256x32xf32>, vector<4x32xf32> -> vector<4x32xf32>
    %cst_24 = arith.constant dense<0.000000e+00> : vector<4x32xf32>
    %14 = tpu.matmul %2, %13, %cst_24 {dimension_numbers = #tpu.dot_dimension_numbers<[1], [0], [0], [1], [0, 0, 1, 1], [], []>} : vector<4x4xf32>, vector<4x32xf32>, vector<4x32xf32> -> vector<4x32xf32>
    %15 = vector.broadcast %3 : vector<4x1xf32> to vector<4x32xf32>
    %16 = arith.addf %14, %15 : vector<4x32xf32>
    %17 = arith.negf %16 : vector<4x32xf32>
    %18 = math.exp %17 : vector<4x32xf32>
    %cst_25 = arith.constant 1.000000e+00 : f32
    %19 = vector.broadcast %cst_25 : f32 to vector<4x32xf32>
    %20 = arith.addf %19, %18 : vector<4x32xf32>
    %21 = arith.divf %19, %20 : vector<4x32xf32>
    %cst_26 = arith.constant dense<0.000000e+00> : vector<4x256xf32>
    %22 = tpu.matmul %21, %9, %cst_26 {dimension_numbers = #tpu.dot_dimension_numbers<[1], [0], [0], [1], [0, 0, 1, 1], [], []>} : vector<4x32xf32>, vector<32x256xf32>, vector<4x256xf32> -> vector<4x256xf32>
    %23 = arith.mulf %1, %22 : vector<4x256xf32>
    %cst_27 = arith.constant dense<0.000000e+00> : vector<4x256xf32>
    %24 = tpu.matmul %21, %10, %cst_27 {dimension_numbers = #tpu.dot_dimension_numbers<[1], [0], [0], [1], [0, 0, 1, 1], [], []>} : vector<4x32xf32>, vector<32x256xf32>, vector<4x256xf32> -> vector<4x256xf32>
    %25 = arith.mulf %23, %24 : vector<4x256xf32>
    %cst_28 = arith.constant dense<0.000000e+00> : vector<4x256xf32>
    %26 = tpu.matmul %25, %11, %cst_28 {dimension_numbers = #tpu.dot_dimension_numbers<[1], [0], [0], [1], [0, 0, 1, 1], [], []>} : vector<4x256xf32>, vector<256x256xf32>, vector<4x256xf32> -> vector<4x256xf32>
    %27 = arith.subf %25, %26 : vector<4x256xf32>
    %28 = arith.mulf %27, %27 : vector<4x256xf32>
    %cst_29 = arith.constant dense<0.000000e+00> : vector<4x256xf32>
    %29 = tpu.matmul %28, %11, %cst_29 {dimension_numbers = #tpu.dot_dimension_numbers<[1], [0], [0], [1], [0, 0, 1, 1], [], []>} : vector<4x256xf32>, vector<256x256xf32>, vector<4x256xf32> -> vector<4x256xf32>
    %cst_30 = arith.constant 9.99999974E-6 : f32
    %30 = vector.broadcast %cst_30 : f32 to vector<4x256xf32>
    %31 = arith.addf %29, %30 : vector<4x256xf32>
    %32 = math.rsqrt %31 : vector<4x256xf32>
    %33 = arith.mulf %27, %32 : vector<4x256xf32>
    %34 = vector.broadcast %6 : vector<4x1xf32> to vector<4x256xf32>
    %35 = arith.mulf %33, %34 : vector<4x256xf32>
    %36 = vector.broadcast %7 : vector<4x1xf32> to vector<4x256xf32>
    %37 = arith.addf %35, %36 : vector<4x256xf32>
    %cst_31 = arith.constant dense<0.000000e+00> : vector<4x256xf32>
    %38 = tpu.matmul %37, %11, %cst_31 {dimension_numbers = #tpu.dot_dimension_numbers<[1], [0], [0], [1], [0, 0, 1, 1], [], []>} : vector<4x256xf32>, vector<256x256xf32>, vector<4x256xf32> -> vector<4x256xf32>
    %cst_32 = arith.constant dense<0xFF800000> : vector<256xf32>
    %39 = vector.multi_reduction <maximumf>, %38, %cst_32 [0] : vector<4x256xf32> to vector<256xf32>
    %40 = vector.shape_cast %39 : vector<256xf32> to vector<1x256xf32>
    %41 = vector.broadcast %40 : vector<1x256xf32> to vector<4x256xf32>
    %42 = arith.subf %38, %41 : vector<4x256xf32>
    %43 = math.exp %42 : vector<4x256xf32>
    %cst_33 = arith.constant dense<0.000000e+00> : vector<256xf32>
    %44 = vector.multi_reduction <add>, %43, %cst_33 [0] : vector<4x256xf32> to vector<256xf32>
    %45 = vector.shape_cast %44 : vector<256xf32> to vector<1x256xf32>
    %46 = vector.broadcast %45 : vector<1x256xf32> to vector<4x256xf32>
    %47 = arith.divf %43, %46 : vector<4x256xf32>
    %c17_i32 = arith.constant 17 : i32
    %48 = tpu.dynamic_rotate %1 by %c17_i32 dim 1 : vector<4x256xf32>, i32 -> vector<4x256xf32>
    %49 = vector.extract_strided_slice %12 {offsets = [0, 0], sizes = [1, 256], strides = [1, 1]} : vector<9x256xf32> to vector<1x256xf32>
    %50 = vector.broadcast %49 : vector<1x256xf32> to vector<4x256xf32>
    %51 = arith.mulf %48, %50 : vector<4x256xf32>
    %c16_i32 = arith.constant 16 : i32
    %52 = tpu.dynamic_rotate %1 by %c16_i32 dim 1 : vector<4x256xf32>, i32 -> vector<4x256xf32>
    %53 = vector.extract_strided_slice %12 {offsets = [1, 0], sizes = [1, 256], strides = [1, 1]} : vector<9x256xf32> to vector<1x256xf32>
    %54 = vector.broadcast %53 : vector<1x256xf32> to vector<4x256xf32>
    %55 = arith.mulf %52, %54 : vector<4x256xf32>
    %c15_i32 = arith.constant 15 : i32
    %56 = tpu.dynamic_rotate %1 by %c15_i32 dim 1 : vector<4x256xf32>, i32 -> vector<4x256xf32>
    %57 = vector.extract_strided_slice %12 {offsets = [2, 0], sizes = [1, 256], strides = [1, 1]} : vector<9x256xf32> to vector<1x256xf32>
    %58 = vector.broadcast %57 : vector<1x256xf32> to vector<4x256xf32>
    %59 = arith.mulf %56, %58 : vector<4x256xf32>
    %c1_i32 = arith.constant 1 : i32
    %60 = tpu.dynamic_rotate %1 by %c1_i32 dim 1 : vector<4x256xf32>, i32 -> vector<4x256xf32>
    %61 = vector.extract_strided_slice %12 {offsets = [3, 0], sizes = [1, 256], strides = [1, 1]} : vector<9x256xf32> to vector<1x256xf32>
    %62 = vector.broadcast %61 : vector<1x256xf32> to vector<4x256xf32>
    %63 = arith.mulf %60, %62 : vector<4x256xf32>
    %c255_i32 = arith.constant 255 : i32
    %64 = tpu.dynamic_rotate %1 by %c255_i32 dim 1 : vector<4x256xf32>, i32 -> vector<4x256xf32>
    %65 = vector.extract_strided_slice %12 {offsets = [5, 0], sizes = [1, 256], strides = [1, 1]} : vector<9x256xf32> to vector<1x256xf32>
    %66 = vector.broadcast %65 : vector<1x256xf32> to vector<4x256xf32>
    %67 = arith.mulf %64, %66 : vector<4x256xf32>
    %c241_i32 = arith.constant 241 : i32
    %68 = tpu.dynamic_rotate %1 by %c241_i32 dim 1 : vector<4x256xf32>, i32 -> vector<4x256xf32>
    %69 = vector.extract_strided_slice %12 {offsets = [6, 0], sizes = [1, 256], strides = [1, 1]} : vector<9x256xf32> to vector<1x256xf32>
    %70 = vector.broadcast %69 : vector<1x256xf32> to vector<4x256xf32>
    %71 = arith.mulf %68, %70 : vector<4x256xf32>
    %c240_i32 = arith.constant 240 : i32
    %72 = tpu.dynamic_rotate %1 by %c240_i32 dim 1 : vector<4x256xf32>, i32 -> vector<4x256xf32>
    %73 = vector.extract_strided_slice %12 {offsets = [7, 0], sizes = [1, 256], strides = [1, 1]} : vector<9x256xf32> to vector<1x256xf32>
    %74 = vector.broadcast %73 : vector<1x256xf32> to vector<4x256xf32>
    %75 = arith.mulf %72, %74 : vector<4x256xf32>
    %c239_i32 = arith.constant 239 : i32
    %76 = tpu.dynamic_rotate %1 by %c239_i32 dim 1 : vector<4x256xf32>, i32 -> vector<4x256xf32>
    %77 = vector.extract_strided_slice %12 {offsets = [8, 0], sizes = [1, 256], strides = [1, 1]} : vector<9x256xf32> to vector<1x256xf32>
    %78 = vector.broadcast %77 : vector<1x256xf32> to vector<4x256xf32>
    %79 = arith.mulf %76, %78 : vector<4x256xf32>
    %80 = tpu.concatenate %51, %55, %59, %63, %1, %67, %71, %75, %79 in 0 : vector<4x256xf32>, vector<4x256xf32>, vector<4x256xf32>, vector<4x256xf32>, vector<4x256xf32>, vector<4x256xf32>, vector<4x256xf32>, vector<4x256xf32>, vector<4x256xf32> -> vector<36x256xf32>
    %cst_34 = arith.constant dense<0.000000e+00> : vector<4x256xf32>
    %81 = tpu.matmul %4, %80, %cst_34 {dimension_numbers = #tpu.dot_dimension_numbers<[1], [0], [0], [1], [0, 0, 1, 1], [], []>} : vector<4x36xf32>, vector<36x256xf32>, vector<4x256xf32> -> vector<4x256xf32>
    %82 = vector.broadcast %5 : vector<4x1xf32> to vector<4x256xf32>
    %83 = arith.addf %81, %82 : vector<4x256xf32>
    %cst_35 = arith.constant dense<0.000000e+00> : vector<4x256xf32>
    %84 = tpu.matmul %1, %11, %cst_35 {dimension_numbers = #tpu.dot_dimension_numbers<[1], [0], [0], [1], [0, 0, 1, 1], [], []>} : vector<4x256xf32>, vector<256x256xf32>, vector<4x256xf32> -> vector<4x256xf32>
    %85 = arith.subf %1, %84 : vector<4x256xf32>
    %86 = arith.mulf %85, %85 : vector<4x256xf32>
    %cst_36 = arith.constant dense<0.000000e+00> : vector<4x256xf32>
    %87 = tpu.matmul %86, %11, %cst_36 {dimension_numbers = #tpu.dot_dimension_numbers<[1], [0], [0], [1], [0, 0, 1, 1], [], []>} : vector<4x256xf32>, vector<256x256xf32>, vector<4x256xf32> -> vector<4x256xf32>
    %cst_37 = arith.constant 9.99999974E-6 : f32
    %88 = vector.broadcast %cst_37 : f32 to vector<4x256xf32>
    %89 = arith.addf %87, %88 : vector<4x256xf32>
    %90 = math.rsqrt %89 : vector<4x256xf32>
    %91 = arith.mulf %85, %90 : vector<4x256xf32>
    %92 = vector.broadcast %6 : vector<4x1xf32> to vector<4x256xf32>
    %93 = arith.mulf %91, %92 : vector<4x256xf32>
    %94 = vector.broadcast %7 : vector<4x1xf32> to vector<4x256xf32>
    %95 = arith.addf %93, %94 : vector<4x256xf32>
    %cst_38 = arith.constant dense<0.000000e+00> : vector<4x256xf32>
    %96 = tpu.matmul %95, %11, %cst_38 {dimension_numbers = #tpu.dot_dimension_numbers<[1], [0], [0], [1], [0, 0, 1, 1], [], []>} : vector<4x256xf32>, vector<256x256xf32>, vector<4x256xf32> -> vector<4x256xf32>
    %97 = arith.negf %96 : vector<4x256xf32>
    %98 = math.exp %97 : vector<4x256xf32>
    %cst_39 = arith.constant 1.000000e+00 : f32
    %99 = vector.broadcast %cst_39 : f32 to vector<4x256xf32>
    %100 = arith.addf %99, %98 : vector<4x256xf32>
    %101 = arith.divf %99, %100 : vector<4x256xf32>
    %102 = arith.negf %95 : vector<4x256xf32>
    %103 = math.exp %102 : vector<4x256xf32>
    %cst_40 = arith.constant 1.000000e+00 : f32
    %104 = vector.broadcast %cst_40 : f32 to vector<4x256xf32>
    %105 = arith.addf %104, %103 : vector<4x256xf32>
    %106 = arith.divf %104, %105 : vector<4x256xf32>
    %107 = arith.mulf %101, %106 : vector<4x256xf32>
    %108 = arith.addf %83, %107 : vector<4x256xf32>
    %cst_41 = arith.constant dense<0.000000e+00> : vector<4x256xf32>
    %109 = tpu.matmul %108, %11, %cst_41 {dimension_numbers = #tpu.dot_dimension_numbers<[1], [0], [0], [1], [0, 0, 1, 1], [], []>} : vector<4x256xf32>, vector<256x256xf32>, vector<4x256xf32> -> vector<4x256xf32>
    %cst_42 = arith.constant dense<0xFF800000> : vector<256xf32>
    %110 = vector.multi_reduction <maximumf>, %109, %cst_42 [0] : vector<4x256xf32> to vector<256xf32>
    %111 = vector.shape_cast %110 : vector<256xf32> to vector<1x256xf32>
    %112 = vector.broadcast %111 : vector<1x256xf32> to vector<4x256xf32>
    %113 = arith.subf %109, %112 : vector<4x256xf32>
    %114 = math.exp %113 : vector<4x256xf32>
    %cst_43 = arith.constant dense<0.000000e+00> : vector<256xf32>
    %115 = vector.multi_reduction <add>, %114, %cst_43 [0] : vector<4x256xf32> to vector<256xf32>
    %116 = vector.shape_cast %115 : vector<256xf32> to vector<1x256xf32>
    %117 = vector.broadcast %116 : vector<1x256xf32> to vector<4x256xf32>
    %118 = arith.divf %114, %117 : vector<4x256xf32>
    %119 = arith.mulf %47, %108 : vector<4x256xf32>
    %120 = arith.mulf %118, %37 : vector<4x256xf32>
    %121 = arith.addf %119, %120 : vector<4x256xf32>
    %cst_44 = arith.constant dense<0.000000e+00> : vector<256xf32>
    %122 = vector.multi_reduction <add>, %121, %cst_44 [0] : vector<4x256xf32> to vector<256xf32>
    %123 = vector.shape_cast %122 : vector<256xf32> to vector<1x256xf32>
    %124 = arith.negf %123 : vector<1x256xf32>
    %125 = math.exp %124 : vector<1x256xf32>
    %cst_45 = arith.constant 1.000000e+00 : f32
    %126 = vector.broadcast %cst_45 : f32 to vector<1x256xf32>
    %127 = arith.addf %126, %125 : vector<1x256xf32>
    %128 = arith.divf %126, %127 : vector<1x256xf32>
    %129 = vector.broadcast %128 : vector<1x256xf32> to vector<4x256xf32>
    %130 = arith.mulf %1, %129 : vector<4x256xf32>
    %c0_46 = arith.constant 0 : index
    %c0_47 = arith.constant 0 : index
    %c0_48 = arith.constant 0 : index
    %131 = vector.load %arg13[%c0_46, %c0_47, %c0_48] : memref<1x4x256xf32, #tpu.memory_space<vmem>>, vector<1x4x256xf32>
    %132 = vector.shape_cast %131 : vector<1x4x256xf32> to vector<4x256xf32>
    %133 = vector.shape_cast %130 : vector<4x256xf32> to vector<1x4x256xf32>
    tpu.vector_store %arg13[%c0_46, %c0_47, %c0_48], %133 {strides = array<i32>} : memref<1x4x256xf32, #tpu.memory_space<vmem>>, vector<1x4x256xf32>,
    return
  }
  func.func @transform_0(%arg0: i32) -> (i32, i32, i32) {
    %c0_i32 = arith.constant 0 : i32
    %c0_i32_0 = arith.constant 0 : i32
    %c0_i32_1 = arith.constant 0 : i32
    return %arg0, %c0_i32, %c0_i32_0 : i32, i32, i32
  }
  func.func @transform_1(%arg0: i32) -> (i32, i32) {
    %c0_i32 = arith.constant 0 : i32
    %c0_i32_0 = arith.constant 0 : i32
    %c0_i32_1 = arith.constant 0 : i32
    return %c0_i32, %c0_i32_0 : i32, i32
  }
  func.func @transform_2(%arg0: i32) -> (i32, i32) {
    %c0_i32 = arith.constant 0 : i32
    %c0_i32_0 = arith.constant 0 : i32
    %c0_i32_1 = arith.constant 0 : i32
    return %c0_i32, %c0_i32_0 : i32, i32
  }
  func.func @transform_3(%arg0: i32) -> (i32, i32) {
    %c0_i32 = arith.constant 0 : i32
    %c0_i32_0 = arith.constant 0 : i32
    %c0_i32_1 = arith.constant 0 : i32
    return %c0_i32, %c0_i32_0 : i32, i32
  }
  func.func @transform_4(%arg0: i32) -> (i32, i32) {
    %c0_i32 = arith.constant 0 : i32
    %c0_i32_0 = arith.constant 0 : i32
    %c0_i32_1 = arith.constant 0 : i32
    return %c0_i32, %c0_i32_0 : i32, i32
  }
  func.func @transform_5(%arg0: i32) -> (i32, i32) {
    %c0_i32 = arith.constant 0 : i32
    %c0_i32_0 = arith.constant 0 : i32
    %c0_i32_1 = arith.constant 0 : i32
    return %c0_i32, %c0_i32_0 : i32, i32
  }
  func.func @transform_6(%arg0: i32) -> (i32, i32) {
    %c0_i32 = arith.constant 0 : i32
    %c0_i32_0 = arith.constant 0 : i32
    %c0_i32_1 = arith.constant 0 : i32
    return %c0_i32, %c0_i32_0 : i32, i32
  }
  func.func @transform_7(%arg0: i32) -> (i32, i32) {
    %c0_i32 = arith.constant 0 : i32
    %c0_i32_0 = arith.constant 0 : i32
    %c0_i32_1 = arith.constant 0 : i32
    return %c0_i32, %c0_i32_0 : i32, i32
  }
  func.func @transform_8(%arg0: i32) -> (i32, i32) {
    %c0_i32 = arith.constant 0 : i32
    %c0_i32_0 = arith.constant 0 : i32
    %c0_i32_1 = arith.constant 0 : i32
    return %c0_i32, %c0_i32_0 : i32, i32
  }
  func.func @transform_9(%arg0: i32) -> (i32, i32) {
    %c0_i32 = arith.constant 0 : i32
    %c0_i32_0 = arith.constant 0 : i32
    %c0_i32_1 = arith.constant 0 : i32
    return %c0_i32, %c0_i32_0 : i32, i32
  }
  func.func @transform_10(%arg0: i32) -> (i32, i32) {
    %c0_i32 = arith.constant 0 : i32
    %c0_i32_0 = arith.constant 0 : i32
    %c0_i32_1 = arith.constant 0 : i32
    return %c0_i32, %c0_i32_0 : i32, i32
  }
  func.func @transform_11(%arg0: i32) -> (i32, i32) {
    %c0_i32 = arith.constant 0 : i32
    %c0_i32_0 = arith.constant 0 : i32
    %c0_i32_1 = arith.constant 0 : i32
    return %c0_i32, %c0_i32_0 : i32, i32
  }
  func.func @transform_12(%arg0: i32) -> (i32, i32, i32) {
    %c0_i32 = arith.constant 0 : i32
    %c0_i32_0 = arith.constant 0 : i32
    %c0_i32_1 = arith.constant 0 : i32
    return %arg0, %c0_i32, %c0_i32_0 : i32, i32, i32
  }
}

</mosaic_0001>

<bundles_post_ra>
// kernel: tpu_custom_call.1
= control target key start
LH: loop header
LB: loop body
LE: loop exit
PB: predicated region body
PF: predicated region fallthrough
CT: control target
= control target key end

     0   :  { %s3450_s0 = inlined_call_operand.vmem [shape: f32[2,4,256], index: 0, kind: input, shape index: {}]   ;;  %s3451_s1 = inlined_call_operand.vmem [shape: f32[4,4], index: 1, kind: input, shape index: {}]   ;;  %s3452_s2 = inlined_call_operand.vmem [shape: f32[4,1], index: 2, kind: input, shape index: {}]   ;;  %s3453_s3 = inlined_call_operand.vmem [shape: f32[4,36], index: 3, kind: input, shape index: {}]   ;;  %s3454_s4 = inlined_call_operand.vmem [shape: f32[4,1], index: 4, kind: input, shape index: {}]   ;;  %s3455_s5 = inlined_call_operand.vmem [shape: f32[4,1], index: 5, kind: input, shape index: {}]   ;;  %s3456_s6 = inlined_call_operand.vmem [shape: f32[4,1], index: 6, kind: input, shape index: {}]   ;;  %s3457_s7 = inlined_call_operand.vmem [shape: f32[256,32], index: 7, kind: input, shape index: {}]   ;;  %s3458_s8 = inlined_call_operand.vmem [shape: f32[32,256], index: 8, kind: input, shape index: {}]   ;;  %s3459_s9 = inlined_call_operand.vmem [shape: f32[32,256], index: 9, kind: input, shape index: {}]   ;;  %s3460_s10 = inlined_call_operand.hbm [shape: f32[256,256], index: 10, kind: input, shape index: {}]   ;;  %s3461_s11 = inlined_call_operand.vmem [shape: f32[9,256], index: 11, kind: input, shape index: {}]   ;;  %s3462_s12 = inlined_call_operand.hbm [shape: f32[2,4,256], index: 12, kind: output, shape index: {}]  }
   0x1   :  { %3561 = sst [smem:[#allocation52_spill]] %s3460_s10 }
   0x2   :  { %17 = vsyncpa [#allocation3], 0 }
   0x3   :  { %18 = vsyncpa [#allocation4], 0 }
   0x4   :  { %20 = vsyncpa [#allocation4 + $0x1], 0  ;;  %s2332_s21 = smov 0   ;;  %s2334_s22 = smov 0  }
   0x5   :  { %s2336_s23 = smov 0   ;;  %s2338_s24 = smov 0  }
   0x6 LB: > { %3562 = sst [smem:[#allocation8_spill]] %s2245_s23  ;;  %s2353_s25 = sadd.s32 4294967295, %s2249_s24   ;;  %s2249_s24 = sphi %s2338_s24, %s3703_s24   ;;  %s2245_s23 = sphi %s2336_s23, %s3700_s23   ;;  %s2241_s22 = sphi %s2334_s22, %s3702_s22   ;;  %s2237_s21 = sphi %s2332_s21, %s3701_s21  }
   0x7   : > { %s1915_s26 = sadd.s32 4294967294, %s2249_s24   ;;  %s2357_s27 = sadd.s32 1, %s2249_s24  }
   0x8   : > { %s290_s28 = sadd.s32 1, %s2245_s23  ;;  %s287_s29 = ssub.s32 %s2249_s24, %s2357_s27 }
   0x9   : > { %p300_p0 = scmp.ne.s32.totalorder %s2245_s23, %s2241_s22  ;;  %p288_p1 = scmp.eq.s32.totalorder %s287_s29, 0 }
   0xa   : > { %p301_p2 = scmp.eq.s32.totalorder %s2353_s25, 1  ;;  %p306_p3 = scmp.ne.s32.totalorder %s2241_s22, %s2237_s21 }
   0xb   : > { %p307_p4 = scmp.eq.s32.totalorder %s1915_s26, 1  ;;  %p1916_p7 = scmp.ge.s32.totalorder %s2249_s24, 1 }
   0xc   : > { %s2368_s30 = scalar_select %p288_p1, %s2245_s23, %s290_s28  }
   0xd   : > { %p2370_p5 = por %p301_p2, %p300_p0  ;;  %p2374_p6 = por %p307_p4, %p306_p3 }
   0xe   : > { %3563 = sst [smem:[#allocation9_spill]] %s2368_s30  ;;  %p314_p8 = scmp.lt.s32.totalorder %s2249_s24, 3 }
   0xf   : > { %s3565_s14 = scalar_select %p2374_p6, 1, 0 }
  0x10   : > { %p2002_p9 = scmp.eq.s32.totalorder %s2353_s25, 0  ;;  %p2381_p10 = pnand %p1916_p7, %p314_p8 }
  0x11   : > { %s2251_s16 = smov [#allocation2]  }
  0x12   : > { %s353_s17 = sshll.u32 %s2251_s16, 4  ;;  %p1994_p11 = pneg %p2381_p10  ;;  %s354_s17 = int_to_ptr.vmem [resolvable:$true] %s353_s17 }
  0x13   : > { %s2170_s18 = scalar_lea.vmem %s354_s17, 8192  ;;  %p2178_p3 = scmp.lt.s32.totalorder %s354_s17, %s354_s17 }
  0x14   : > { %p1995_p12 = pnand %p2002_p9, %p1994_p11  ;;  %p2171_p0 = scmp.ne.s32.totalorder %s354_s17, %s2170_s18 }
  0x15   : > { %p2179_p4 = scmp.lt.s32.totalorder %s2170_s18, %s2170_s18 }
  0x16   : > { %p2161_p13 = pneg %p1995_p12 }
  0x17   : > { %p2180_p6 = por %p2179_p4, %p2178_p3 }
  0x18   : > { %p2173_p1 = pnand %p2171_p0, %p2161_p13 }
  0x1a   : > { %p2174_p2 = pneg %p2173_p1 }
  0x1c   : > { %p2181_p7 = pnand %p2180_p6, %p2174_p2 }
  0x1e   : > { %2184 = shalt.err (!%p2181_p7)
}
  0x1f   : > { %s2252_s19 = smov 256   ;;  %s2253_s20 = smov 16  }
  0x20   : > { %s3567_s10 = sld [smem:[#allocation52_spill]] }
  0x22   : > { %380 = sbr.rel (%p2381_p10) target bundleno = 1973 (0x7b5), region = 68 }
  0x26   : > { %1997 = dma.hbm_to_vmem [thread:$0]  (!%p1995_p12), %s3567_s10, 8192, %s354_s17, [#allocation3], %s2252_s19, %s2252_s19, %s2253_s20  }
  0x27   : > { %2228 = dma.done.wait (%p2002_p9), [#allocation3], 8192  }
  0x28   : > { %2230 = vsyncadd (%p2002_p9), [#allocation3], 4294959104  ;;  %p422_p8 = scmp.lt.s32.totalorder %s2353_s25, 1  ;;  %v465_v0 = vld [vmem:[%s3457_s7 + $0xf8] sm:$0xff]  ;;  %v464_v2 = vld [vmem:[%s3457_s7 + $0xf0] sm:$0xff]  ;;  %v3464_v34 = vmov 0.0  }
  0x29   : > { %v449_v1 = vld [vmem:[%s3457_s7 + $0x78] sm:$0xff]  ;;  %1946 = vmatprep.subr.mxu0 %v465_v0  ;;  %v448_v3 = vld [vmem:[%s3457_s7 + $0x70] sm:$0xff]  ;;  %v463_v4 = vld [vmem:[%s3457_s7 + $0xe8] sm:$0xff]  ;;  %vm2255_vm0 = vmmov 0   ;;  %v2256_v36 = vmov 0   ;;  %s2257_s15 = smov 111  }
  0x2a   : > { %s423_s19 = scalar_select %p422_p8, %s2353_s25, 1  ;;  %1947 = vmatpush3.msra.mxu0 %v449_v1  ;;  %v447_v5 = vld [vmem:[%s3457_s7 + $0x68] sm:$0xff]  ;;  %v462_v6 = vld [vmem:[%s3457_s7 + $0xe0] sm:$0xff]  ;;  %v461_v8 = vld [vmem:[%s3457_s7 + $0xd8] sm:$0xff]  ;;  %2052 = vset.pattern.permute.xlu0 %v2256_v36  ;;  %vm632_vm1 = vcmask 1043456   ;;  %vm628_vm2 = vcmask 31744  }
  0x2b   : > { %1948 = vmatprep.subr.mxu0 %v464_v2  ;;  %v446_v7 = vld [vmem:[%s3457_s7 + $0x60] sm:$0xff]  ;;  %v445_v9 = vld [vmem:[%s3457_s7 + $0x58] sm:$0xff]  ;;  %v460_v10 = vld [vmem:[%s3457_s7 + $0xd0] sm:$0xff]  ;;  %2053 = vset.pattern.permute.xlu1 %v2256_v36  ;;  %s2258_s20 = smov 127   ;;  %s2259_s26 = smov 112   ;;  %vm712_vm3 = vcmask 261120  }
  0x2c   : > { %1949 = vmatpush3.msra.mxu0 %v448_v3  ;;  %s1944_s17 = sshll.u32 %s423_s19, 3  ;;  %v444_v11 = vld [vmem:[%s3457_s7 + $0x50] sm:$0xff]  ;;  %v459_v12 = vld [vmem:[%s3457_s7 + $0xc8] sm:$0xff]  ;;  %v458_v16 = vld [vmem:[%s3457_s7 + $0xc0] sm:$0xff]  ;;  %s2260_s10 = smov 113   ;;  %vm1342_vm12 = vcmask 293888  }
  0x2d   : > { %1950 = vmatprep.subr.mxu0 %v463_v4  ;;  %s2433_s30 = scalar_lea.vmem %s3450_s0, %s1944_s17  ;;  %v443_v14 = vld [vmem:[%s3457_s7 + $0x48] sm:$0xff]  ;;  %v442_v17 = vld [vmem:[%s3457_s7 + $0x40] sm:$0xff]  ;;  %v457_v18 = vld [vmem:[%s3457_s7 + $0xb8] sm:$0xff]  ;;  %s2261_s23 = smov 1  }
  0x2e   : > { %1951 = vmatpush3.msra.mxu0 %v447_v5  ;;  %v2445_v13 = vld [vmem:[%s2433_s30] sm:$0xff]  ;;  %v441_v19 = vld [vmem:[%s3457_s7 + $0x38] sm:$0xff]  ;;  %v456_v20 = vld [vmem:[%s3457_s7 + $0xb0] sm:$0xff]  ;;  %s2262_s17 = smov 16   ;;  %s2263_s28 = smov 15  }
  0x2f   : > { %1952 = vmatprep.subr.mxu0 %v462_v6  ;;  %v2452_v15 = vcombine.high %v2445_v13, %v2445_v13  ;;  %v440_v21 = vld [vmem:[%s3457_s7 + $0x30] sm:$0xff]  ;;  %v455_v22 = vld [vmem:[%s3457_s7 + $0xa8] sm:$0xff]  ;;  %v454_v24 = vld [vmem:[%s3457_s7 + $0xa0] sm:$0xff]  ;;  %1288 = vrot.lane.b32.xlu1 %v2445_v13, %s2257_s15  ;;  %s2264_s29 = smov 17  }
  0x30   : > { %1953 = vmatpush3.msra.mxu0 %v446_v7  ;;  %v439_v23 = vld [vmem:[%s3457_s7 + $0x28] sm:$0xff]  ;;  %v438_v25 = vld [vmem:[%s3457_s7 + $0x20] sm:$0xff]  ;;  %v453_v26 = vld [vmem:[%s3457_s7 + $0x98] sm:$0xff] }
  0x31   : > { %1954 = vmatprep.subr.mxu0 %v461_v8  ;;  %3568 = vst [vmem:[#allocation10_spill] sm:$0xff] %v2452_v15  ;;  %617 = vmatprep.mubr.f32.mxu0 %v2452_v15  ;;  %v437_v27 = vld [vmem:[%s3457_s7 + $0x18] sm:$0xff]  ;;  %v452_v28 = vld [vmem:[%s3457_s7 + $0x90] sm:$0xff]  ;;  %v451_v30 = vld [vmem:[%s3457_s7 + $0x88] sm:$0xff] }
  0x32   : > { %1955 = vmatpush3.msra.mxu0 %v445_v9  ;;  %v436_v29 = vld [vmem:[%s3457_s7 + $0x10] sm:$0xff]  ;;  %v435_v31 = vld [vmem:[%s3457_s7 + $0x8] sm:$0xff]  ;;  %v450_v32 = vld [vmem:[%s3457_s7 + $0x80] sm:$0xff] }
  0x33   : > { %1956 = vmatprep.subr.mxu0 %v460_v10  ;;  %v434_v33 = vld [vmem:[%s3457_s7] sm:$0xff]  ;;  %1237 = vrot.lane.b32.xlu1 %v2445_v13, %s2258_s20  ;;  %v473_v42 = vld [vmem:[%s3458_s8 + $0x38] sm:$0xff]  ;;  %v472_v43 = vld [vmem:[%s3458_s8 + $0x30] sm:$0xff] }
  0x34   : > { %1957 = vmatpush3.msra.mxu0 %v444_v11  ;;  %v429_v35 = vld [vmem:[%s3452_s2] sm:$0xf]  ;;  %v471_v44 = vld [vmem:[%s3458_s8 + $0x28] sm:$0xff]  ;;  %v469_v46 = vld [vmem:[%s3458_s8 + $0x18] sm:$0xff] }
  0x35   : > { %1958 = vmatprep.subr.mxu0 %v459_v12  ;;  %625 = vperm.xlu0 %2052, %v429_v35   ;;  %v433_v37 = vld [vmem:[%s3456_s6] sm:$0xf]  ;;  %v468_v47 = vld [vmem:[%s3458_s8 + $0x10] sm:$0xff]  ;;  %v467_v48 = vld [vmem:[%s3458_s8 + $0x8] sm:$0xff] }
  0x36   : > { %1959 = vmatpush3.msra.mxu0 %v443_v14  ;;  %v428_v41 = vld [vmem:[%s3451_s1] sm:$0xf]  ;;  %v481_v50 = vld [vmem:[%s3459_s9 + $0x38] sm:$0xff]  ;;  %v2568_v52 = vld [vmem:[#allocation2 + $0xf0] sm:$0xff] }
  0x37   : > { %1960 = vmatprep.subr.mxu0 %v458_v16  ;;  %1273 = vrot.lane.b32.xlu1 %v2452_v15, %s2259_s26  ;;  %v470_v45 = vld [vmem:[%s3458_s8 + $0x20] sm:$0xff]  ;;  %v2566_v51 = vld [vmem:[#allocation2 + $0xf8] sm:$0xff]  ;;  %v2570_v53 = vld [vmem:[#allocation2 + $0xe8] sm:$0xff] }
  0x38   : > { %1961 = vmatpush3.msra.mxu0 %v442_v17  ;;  %v466_v49 = vld [vmem:[%s3458_s8] sm:$0xff]  ;;  %3569 = vst [vmem:[#allocation11_spill] sm:$0xff] %v2566_v51  ;;  %871 = vmatprep.subr.mxu1 %v2566_v51  ;;  %v2576_v55 = vld [vmem:[#allocation2 + $0xd8] sm:$0xff]  ;;  %v2579_v56 = vld [vmem:[#allocation2 + $0xd0] sm:$0xff] }
  0x39   : > { %1962 = vmatprep.subr.mxu0 %v457_v18  ;;  %1271 = vrot.lane.b32.xlu0 %v2445_v13, %s2259_s26  ;;  %v2573_v54 = vld [vmem:[#allocation2 + $0xe0] sm:$0xff]  ;;  %v2582_v57 = vld [vmem:[#allocation2 + $0xc8] sm:$0xff]  ;;  %v2588_v59 = vld [vmem:[#allocation2 + $0xb8] sm:$0xff] }
  0x3a   : > { %1963 = vmatpush3.msra.mxu0 %v441_v19  ;;  %872 = vmatpush1.msra.mxu1 %v2568_v52  ;;  %v2585_v58 = vld [vmem:[#allocation2 + $0xc0] sm:$0xff]  ;;  %v2591_v60 = vld [vmem:[#allocation2 + $0xb0] sm:$0xff]  ;;  %v2594_v61 = vld [vmem:[#allocation2 + $0xa8] sm:$0xff] }
  0x3b   : > { %1964 = vmatprep.subr.mxu0 %v456_v20  ;;  %1254 = vrot.lane.b32.xlu1 %v2445_v13, %s2260_s10  ;;  %v2597_v62 = vld [vmem:[#allocation2 + $0xa0] sm:$0xff]  ;;  %v2600_v63 = vld [vmem:[#allocation2 + $0x98] sm:$0xff]  ;;  %v2603_v0 = vld [vmem:[#allocation2 + $0x90] sm:$0xff] }
  0x3c   : > { %1965 = vmatpush3.msra.mxu0 %v440_v21  ;;  %873 = vmatprep.subr.mxu1 %v2570_v53  ;;  %v2606_v1 = vld [vmem:[#allocation2 + $0x88] sm:$0xff]  ;;  %v2609_v2 = vld [vmem:[#allocation2 + $0x80] sm:$0xff]  ;;  %v2612_v3 = vld [vmem:[#allocation2 + $0x78] sm:$0xff] }
  0x3d   : > { %1966 = vmatprep.subr.mxu0 %v455_v22  ;;  %1290 = vrot.lane.b32.xlu0 %v2452_v15, %s2257_s15  ;;  %v2615_v4 = vld [vmem:[#allocation2 + $0x70] sm:$0xff]  ;;  %v2618_v5 = vld [vmem:[#allocation2 + $0x68] sm:$0xff]  ;;  %v2621_v6 = vld [vmem:[#allocation2 + $0x60] sm:$0xff] }
  0x3e   : > { %1967 = vmatpush3.msra.mxu0 %v439_v23  ;;  %874 = vmatpush1.msra.mxu1 %v2573_v54  ;;  %v2624_v7 = vld [vmem:[#allocation2 + $0x58] sm:$0xff]  ;;  %v2627_v8 = vld [vmem:[#allocation2 + $0x50] sm:$0xff]  ;;  %v2630_v9 = vld [vmem:[#allocation2 + $0x48] sm:$0xff] }
  0x3f   : > { %1968 = vmatprep.subr.mxu0 %v454_v24  ;;  %1220 = vrot.lane.b32.xlu1 %v2445_v13, %s2261_s23  ;;  %v2633_v10 = vld [vmem:[#allocation2 + $0x40] sm:$0xff]  ;;  %v2636_v11 = vld [vmem:[#allocation2 + $0x38] sm:$0xff]  ;;  %v2639_v12 = vld [vmem:[#allocation2 + $0x30] sm:$0xff] }
  0x40   : > { %1969 = vmatpush3.msra.mxu0 %v438_v25  ;;  %875 = vmatprep.subr.mxu1 %v2576_v55  ;;  %v2642_v14 = vld [vmem:[#allocation2 + $0x28] sm:$0xff]  ;;  %v2645_v16 = vld [vmem:[#allocation2 + $0x20] sm:$0xff]  ;;  %v2648_v17 = vld [vmem:[#allocation2 + $0x18] sm:$0xff] }
  0x41   : > { %1970 = vmatprep.subr.mxu0 %v453_v26  ;;  %1239 = vrot.lane.b32.xlu0 %v2452_v15, %s2258_s20  ;;  %3570 = vst [vmem:[#allocation12_spill] sm:$0xff] %v2642_v14  ;;  %3571 = vst [vmem:[#allocation13_spill] sm:$0xff] %v2645_v16  ;;  %v2651_v18 = vld [vmem:[#allocation2 + $0x10] sm:$0xff]  ;;  %v2654_v19 = vld [vmem:[#allocation2 + $0x8] sm:$0xff]  ;;  %s2266_s20 = smov [#allocation5]  }
  0x42   : > { %1971 = vmatpush3.msra.mxu0 %v437_v27  ;;  %876 = vmatpush1.msra.mxu1 %v2579_v56  ;;  %3572 = vst [vmem:[#allocation14_spill] sm:$0xff] %v2648_v17  ;;  %3573 = vst [vmem:[#allocation15_spill] sm:$0xff] %v2651_v18  ;;  %v2657_v20 = vld [vmem:[#allocation2] sm:$0xff]  ;;  %v2660_v21 = vld [vmem:[#allocation2 + $0x1f8] sm:$0xff]  ;;  %s2189_s26 = sshll.u32 %s2266_s20, 4  ;;  %s2190_s26 = int_to_ptr.vmem [resolvable:$false] %s2189_s26 }
  0x43   : > { %1972 = vmatprep.subr.mxu0 %v452_v28  ;;  %1186 = vrot.lane.b32.xlu1 %v2445_v13, %s2262_s17  ;;  %3574 = vst [vmem:[#allocation16_spill] sm:$0xff] %v2654_v19  ;;  %3575 = vst [vmem:[#allocation17_spill] sm:$0xff] %v2657_v20  ;;  %v2663_v22 = vld [vmem:[#allocation2 + $0x1f0] sm:$0xff]  ;;  %v2666_v23 = vld [vmem:[#allocation2 + $0x1e8] sm:$0xff] }
  0x44   : > { %1973 = vmatpush3.msra.mxu0 %v436_v29  ;;  %877 = vmatprep.subr.mxu1 %v2582_v57  ;;  %3576 = vst [vmem:[#allocation18_spill] sm:$0xff] %v2660_v21  ;;  %3577 = vst [vmem:[#allocation19_spill] sm:$0xff] %v2663_v22  ;;  %v2669_v24 = vld [vmem:[#allocation2 + $0x1e0] sm:$0xff]  ;;  %v2672_v25 = vld [vmem:[#allocation2 + $0x1d8] sm:$0xff] }
  0x45   : > { %1974 = vmatprep.subr.mxu0 %v451_v30  ;;  %1256 = vrot.lane.b32.xlu0 %v2452_v15, %s2260_s10  ;;  %3578 = vst [vmem:[#allocation20_spill] sm:$0xff] %v2666_v23  ;;  %3579 = vst [vmem:[#allocation21_spill] sm:$0xff] %v2669_v24  ;;  %v2675_v26 = vld [vmem:[#allocation2 + $0x1d0] sm:$0xff]  ;;  %v2678_v27 = vld [vmem:[#allocation2 + $0x1c8] sm:$0xff] }
  0x46   : > { %1975 = vmatpush3.msra.mxu0 %v435_v31  ;;  %878 = vmatpush1.msra.mxu1 %v2585_v58  ;;  %3580 = vst [vmem:[#allocation22_spill] sm:$0xff] %v2672_v25  ;;  %3581 = vst [vmem:[#allocation23_spill] sm:$0xff] %v2675_v26  ;;  %v2681_v28 = vld [vmem:[#allocation2 + $0x1c0] sm:$0xff]  ;;  %v2684_v29 = vld [vmem:[#allocation2 + $0x1b8] sm:$0xff] }
  0x47   : > { %1976 = vmatprep.subr.mxu0 %v450_v32  ;;  %1203 = vrot.lane.b32.xlu1 %v2445_v13, %s2263_s28  ;;  %3582 = vst [vmem:[#allocation24_spill] sm:$0xff] %v2678_v27  ;;  %3583 = vst [vmem:[#allocation25_spill] sm:$0xff] %v2681_v28  ;;  %v2687_v30 = vld [vmem:[#allocation2 + $0x1b0] sm:$0xff]  ;;  %v2690_v31 = vld [vmem:[#allocation2 + $0x1a8] sm:$0xff] }
  0x48   : > { %1977 = vmatpush3.msra.mxu0 %v434_v33  ;;  %879 = vmatprep.subr.mxu1 %v2588_v59  ;;  %3584 = vst [vmem:[#allocation26_spill] sm:$0xff] %v2684_v29  ;;  %3585 = vst [vmem:[#allocation27_spill] sm:$0xff] %v2687_v30  ;;  %v2693_v32 = vld [vmem:[#allocation2 + $0x1a0] sm:$0xff]  ;;  %v2696_v33 = vld [vmem:[#allocation2 + $0x198] sm:$0xff] }
  0x49   : > { %618 = vmatmul.mubr.f32.vlgmr.msra.gmra.mxu0 %v2445_v13  ;;  %1983 = vmatprep.subr.mxu0 %v3464_v34  ;;  %3586 = vst [vmem:[#allocation28_spill] sm:$0xff] %v2690_v31  ;;  %3587 = vst [vmem:[#allocation29_spill] sm:$0xff] %v2693_v32  ;;  %v2699_v35 = vld [vmem:[#allocation2 + $0x190] sm:$0xff]  ;;  %v2702_v36 = vld [vmem:[#allocation2 + $0x188] sm:$0xff] }
  0x4a   : > { %1985 = vmatprep.mubr.msk.f32.mxu0 %vm2255_vm0, %v3464_v34  ;;  %1222 = vrot.lane.b32.xlu0 %v2452_v15, %s2261_s23  ;;  %3588 = vst [vmem:[#allocation30_spill] sm:$0xff] %v2696_v33  ;;  %3589 = vst [vmem:[#allocation31_spill] sm:$0xff] %v2699_v35  ;;  %s1945_s23 = sshll.u32 %s2353_s25, 7  ;;  %s2191_s25 = scalar_lea.vmem %s2190_s26, 256 }
  0x4b   : > { %1167 = vrot.lane.b32.xlu1 %v2445_v13, %s2264_s29  ;;  %880 = vmatpush1.msra.mxu1 %v2591_v60  ;;  %3590 = vst [vmem:[#allocation32_spill] sm:$0xff] %v2702_v36  ;;  %s1842_s19 = scalar_lea.hbm %s3462_s12, %s1945_s23 }
  0x4c   : > { %881 = vmatprep.subr.mxu1 %v2594_v61 }
  0x4d   : > { %882 = vmatpush1.msra.mxu1 %v2597_v62 }
  0x4e   : > { %1188 = vrot.lane.b32.xlu0 %v2452_v15, %s2262_s17  ;;  %883 = vmatprep.subr.mxu1 %v2600_v63 }
  0x4f   : > { %884 = vmatpush1.msra.mxu1 %v2603_v0 }
  0x50   : > { %885 = vmatprep.subr.mxu1 %v2606_v1 }
  0x51   : > { %886 = vmatpush1.msra.mxu1 %v2609_v2 }
  0x52   : > { %1205 = vrot.lane.b32.xlu0 %v2452_v15, %s2263_s28  ;;  %887 = vmatprep.subr.mxu1 %v2612_v3 }
  0x53   : > { %888 = vmatpush1.msra.mxu1 %v2615_v4 }
  0x54   : > { %889 = vmatprep.subr.mxu1 %v2618_v5 }
  0x55   : > { %890 = vmatpush1.msra.mxu1 %v2621_v6 }
  0x56   : > { %1169 = vrot.lane.b32.xlu0 %v2452_v15, %s2264_s29  ;;  %891 = vmatprep.subr.mxu1 %v2624_v7  ;;  %v2833_v15 = vld [vmem:[#allocation2 + $0x108] sm:$0xff] }
  0x57   : > { %892 = vmatpush1.msra.mxu1 %v2627_v8  ;;  %3606 = vst [vmem:[#allocation48_spill] sm:$0xff] %v2833_v15 }
  0x58   : > { %893 = vmatprep.subr.mxu1 %v2630_v9 }
  0x59   : > { %894 = vmatpush1.msra.mxu1 %v2633_v10 }
  0x5a   : > { %1044 = vperm.xlu0 %2052, %v433_v37   ;;  %895 = vmatprep.subr.mxu1 %v2636_v11  ;;  %v2705_v37 = vld [vmem:[#allocation2 + $0x180] sm:$0xff] }
  0x5b   : > { %896 = vmatpush1.msra.mxu1 %v2639_v12  ;;  %3591 = vst [vmem:[#allocation33_spill] sm:$0xff] %v2705_v37 }
  0x5c   : > { %897 = vmatprep.subr.mxu1 %v2642_v14 }
  0x5d   : > { %898 = vmatpush1.msra.mxu1 %v2645_v16 }
  0x5e   : > { %899 = vmatprep.subr.mxu1 %v2648_v17 }
  0x5f   : > { %900 = vmatpush1.msra.mxu1 %v2651_v18 }
  0x60   : > { %901 = vmatprep.subr.mxu1 %v2654_v19 }
  0x61   : > { %902 = vmatpush1.msra.mxu1 %v2657_v20 }
  0x62   : > { %903 = vmatprep.subr.mxu1 %v2660_v21 }
  0x63   : > { %904 = vmatpush2.msra.mxu1 %v2663_v22 }
  0x64   : > { %905 = vmatprep.subr.mxu1 %v2666_v23 }
  0x65   : > { %906 = vmatpush2.msra.mxu1 %v2669_v24 }
  0x66   : > { %907 = vmatprep.subr.mxu1 %v2672_v25 }
  0x67   : > { %908 = vmatpush2.msra.mxu1 %v2675_v26 }
  0x68   : > { %909 = vmatprep.subr.mxu1 %v2678_v27 }
  0x69   : > { %910 = vmatpush2.msra.mxu1 %v2681_v28 }
  0x6a   : > { %911 = vmatprep.subr.mxu1 %v2684_v29 }
  0x6b   : > { %912 = vmatpush2.msra.mxu1 %v2687_v30 }
  0x6c   : > { %913 = vmatprep.subr.mxu1 %v2690_v31 }
  0x6d   : > { %914 = vmatpush2.msra.mxu1 %v2693_v32 }
  0x6e   : > { %915 = vmatprep.subr.mxu1 %v2696_v33 }
  0x6f   : > { %916 = vmatpush2.msra.mxu1 %v2699_v35 }
  0x70   : > { %917 = vmatprep.subr.mxu1 %v2702_v36 }
  0x71   : > { %918 = vmatpush2.msra.mxu1 %v2705_v37 }
 0x109   : > { %v1978_v38 = vpop.f32.mrf.mxu0 }
 0x10b   : > { %v1979_v39 = vpop.f32.mrf.mxu0 }
 0x10c   : > { %v1980_v40 = vadd.f32 %v1979_v39, %v1978_v38  ;;  %v626_v38 = vpop.permute.xlu0 %625 }
 0x10e   : > { %1984 = vmatpush3.msk.msra.mxu0 %vm632_vm1, %v1980_v40 }
 0x10f   : > { %1986 = vmatmul.mubr.msk.f32.vlgmr.msra.gmra.mxu0 %vm628_vm2, %v428_v41  ;;  %740 = vmatprep.subr.mxu0 %v473_v42 }
 0x110   : > { %780 = vmatprep.mubr.f32.mxu0 %v3464_v34  ;;  %741 = vmatpush1.msra.mxu0 %v472_v43 }
 0x111   : > { %742 = vmatprep.subr.mxu0 %v471_v44 }
 0x112   : > { %743 = vmatpush1.msra.mxu0 %v470_v45  ;;  %v480_v45 = vld [vmem:[%s3459_s9 + $0x30] sm:$0xff] }
 0x113   : > { %744 = vmatprep.subr.mxu0 %v469_v46 }
 0x114   : > { %745 = vmatpush1.msra.mxu0 %v468_v47  ;;  %v479_v47 = vld [vmem:[%s3459_s9 + $0x28] sm:$0xff] }
 0x115   : > { %746 = vmatprep.subr.mxu0 %v467_v48  ;;  %v478_v48 = vld [vmem:[%s3459_s9 + $0x20] sm:$0xff] }
 0x116   : > { %747 = vmatpush1.msra.mxu0 %v466_v49  ;;  %v477_v49 = vld [vmem:[%s3459_s9 + $0x18] sm:$0xff] }
 0x117   : > { %816 = vmatprep.subr.mxu0 %v481_v50  ;;  %v476_v50 = vld [vmem:[%s3459_s9 + $0x10] sm:$0xff] }
 0x1cf   : > { %v702_v39 = vpop.f32.mrf.mxu0 }
 0x1d0   : > { %v703_v40 = vadd.f32 %v702_v39, %v626_v38  ;;  %v475_v38 = vld [vmem:[%s3459_s9 + $0x8] sm:$0xff]  ;;  %v474_v39 = vld [vmem:[%s3459_s9] sm:$0xff] }
 0x1d1   : > { %v1987_v41 = vpop.f32.mrf.mxu0 }
 0x1d2   : > { %v1926_v42 = vmul.f32 -1.442695, %v703_v40  ;;  %v2782_v40 = vld [vmem:[#allocation2 + $0x178] sm:$0xff]  ;;  %v2784_v41 = vld [vmem:[#allocation2 + $0x170] sm:$0xff] }
 0x1d3   : > { %3592 = vst [vmem:[#allocation34_spill] sm:$0xff] %v2782_v40  ;;  %3593 = vst [vmem:[#allocation35_spill] sm:$0xff] %v2784_v41  ;;  %919 = vmatprep.subr.mxu1 %v2782_v40 }
 0x1d4   : > { %2055 = vpow2.f32 %v1926_v42  ;;  %920 = vmatpush2.msra.mxu1 %v2784_v41  ;;  %v2790_v42 = vld [vmem:[#allocation2 + $0x168] sm:$0xff] }
 0x1d5   : > { %3594 = vst [vmem:[#allocation36_spill] sm:$0xff] %v2790_v42  ;;  %921 = vmatprep.subr.mxu1 %v2790_v42 }
 0x1e1   : > { %v2056_v43 = vpop.eup %2055 }
 0x1e2   : > { %v709_v44 = vadd.f32 1.0, %v2056_v43  ;;  %v2793_v43 = vld [vmem:[#allocation2 + $0x160] sm:$0xff] }
 0x1e3   : > { %3595 = vst [vmem:[#allocation37_spill] sm:$0xff] %v2793_v43  ;;  %922 = vmatpush2.msra.mxu1 %v2793_v43 }
 0x1e4   : > { %2057 = vrcp.f32 %v709_v44  ;;  %v2797_v44 = vld [vmem:[#allocation2 + $0x158] sm:$0xff] }
 0x1e5   : > { %3596 = vst [vmem:[#allocation38_spill] sm:$0xff] %v2797_v44  ;;  %923 = vmatprep.subr.mxu1 %v2797_v44 }
 0x1f1   : > { %v2058_v46 = vpop.eup %2057 }
 0x1f2   : > { %1927 = vmatmul.mubr.msk.f32.vlgmr.msra.gmra.mxu0 %vm712_vm3, %v2058_v46 }
 0x1f3   : > { %817 = vmatpush1.msra.mxu0 %v480_v45  ;;  %856 = vmatprep.mubr.f32.mxu0 %v3464_v34  ;;  %v2799_v45 = vld [vmem:[#allocation2 + $0x150] sm:$0xff] }
 0x1f4   : > { %818 = vmatprep.subr.mxu0 %v479_v47  ;;  %3597 = vst [vmem:[#allocation39_spill] sm:$0xff] %v2799_v45  ;;  %924 = vmatpush2.msra.mxu1 %v2799_v45  ;;  %v2809_v47 = vld [vmem:[#allocation2 + $0x140] sm:$0xff]  ;;  %v2831_v34 = vld [vmem:[#allocation2 + $0x110] sm:$0xff] }
 0x1f5   : > { %819 = vmatpush1.msra.mxu0 %v478_v48  ;;  %3599 = vst [vmem:[#allocation41_spill] sm:$0xff] %v2809_v47  ;;  %v2813_v48 = vld [vmem:[#allocation2 + $0x138] sm:$0xff]  ;;  %3605 = vst [vmem:[#allocation47_spill] sm:$0xff] %v2831_v34 }
 0x1f6   : > { %820 = vmatprep.subr.mxu0 %v477_v49  ;;  %3600 = vst [vmem:[#allocation42_spill] sm:$0xff] %v2813_v48  ;;  %v2817_v49 = vld [vmem:[#allocation2 + $0x130] sm:$0xff] }
 0x1f7   : > { %821 = vmatpush1.msra.mxu0 %v476_v50  ;;  %3601 = vst [vmem:[#allocation43_spill] sm:$0xff] %v2817_v49  ;;  %v2821_v50 = vld [vmem:[#allocation2 + $0x128] sm:$0xff] }
 0x1f8   : > { %822 = vmatprep.subr.mxu0 %v475_v38  ;;  %3602 = vst [vmem:[#allocation44_spill] sm:$0xff] %v2821_v50  ;;  %v2825_v38 = vld [vmem:[#allocation2 + $0x120] sm:$0xff] }
 0x1f9   : > { %823 = vmatpush1.msra.mxu0 %v474_v39  ;;  %3603 = vst [vmem:[#allocation45_spill] sm:$0xff] %v2825_v38  ;;  %v2829_v39 = vld [vmem:[#allocation2 + $0x118] sm:$0xff] }
 0x1fa   : > { %1928 = vmatmul.mubr.msk.f32.vlgmr.msra.gmra.mxu0 %vm712_vm3, %v2058_v46  ;;  %951 = vmatprep.subr.mxu0 %v2566_v51  ;;  %v2805_v46 = vld [vmem:[#allocation2 + $0x148] sm:$0xff]  ;;  %3604 = vst [vmem:[#allocation46_spill] sm:$0xff] %v2829_v39 }
 0x1fb   : > { %952 = vmatpush1.msra.mxu0 %v2568_v52  ;;  %3598 = vst [vmem:[#allocation40_spill] sm:$0xff] %v2805_v46  ;;  %925 = vmatprep.subr.mxu1 %v2805_v46 }
 0x1fc   : > { %953 = vmatprep.subr.mxu0 %v2570_v53  ;;  %926 = vmatpush2.msra.mxu1 %v2809_v47 }
 0x1fd   : > { %954 = vmatpush1.msra.mxu0 %v2573_v54  ;;  %927 = vmatprep.subr.mxu1 %v2813_v48 }
 0x1fe   : > { %955 = vmatprep.subr.mxu0 %v2576_v55  ;;  %928 = vmatpush2.msra.mxu1 %v2817_v49 }
 0x1ff   : > { %956 = vmatpush1.msra.mxu0 %v2579_v56  ;;  %929 = vmatprep.subr.mxu1 %v2821_v50 }
 0x200   : > { %957 = vmatprep.subr.mxu0 %v2582_v57  ;;  %930 = vmatpush2.msra.mxu1 %v2825_v38 }
 0x201   : > { %958 = vmatpush1.msra.mxu0 %v2585_v58  ;;  %931 = vmatprep.subr.mxu1 %v2829_v39 }
 0x202   : > { %959 = vmatprep.subr.mxu0 %v2588_v59  ;;  %932 = vmatpush2.msra.mxu1 %v2831_v34 }
 0x203   : > { %960 = vmatpush1.msra.mxu0 %v2591_v60  ;;  %933 = vmatprep.subr.mxu1 %v2833_v15 }
 0x204   : > { %961 = vmatprep.subr.mxu0 %v2594_v61 }
 0x205   : > { %962 = vmatpush1.msra.mxu0 %v2597_v62 }
 0x206   : > { %963 = vmatprep.subr.mxu0 %v2600_v63 }
 0x207   : > { %964 = vmatpush1.msra.mxu0 %v2603_v0 }
 0x208   : > { %965 = vmatprep.subr.mxu0 %v2606_v1 }
 0x209   : > { %966 = vmatpush1.msra.mxu0 %v2609_v2 }
 0x20a   : > { %967 = vmatprep.subr.mxu0 %v2612_v3 }
 0x20b   : > { %968 = vmatpush1.msra.mxu0 %v2615_v4 }
 0x20c   : > { %969 = vmatprep.subr.mxu0 %v2618_v5 }
 0x20d   : > { %970 = vmatpush1.msra.mxu0 %v2621_v6 }
 0x20e   : > { %971 = vmatprep.subr.mxu0 %v2624_v7 }
 0x20f   : > { %972 = vmatpush1.msra.mxu0 %v2627_v8 }
 0x210   : > { %973 = vmatprep.subr.mxu0 %v2630_v9 }
 0x211   : > { %974 = vmatpush1.msra.mxu0 %v2633_v10 }
 0x212   : > { %975 = vmatprep.subr.mxu0 %v2636_v11 }
 0x213   : > { %976 = vmatpush1.msra.mxu0 %v2639_v12 }
 0x214   : > { %977 = vmatprep.subr.mxu0 %v2642_v14 }
 0x215   : > { %978 = vmatpush1.msra.mxu0 %v2645_v16 }
 0x216   : > { %979 = vmatprep.subr.mxu0 %v2648_v17 }
 0x217   : > { %980 = vmatpush1.msra.mxu0 %v2651_v18 }
 0x218   : > { %981 = vmatprep.subr.mxu0 %v2654_v19 }
 0x219   : > { %982 = vmatpush1.msra.mxu0 %v2657_v20 }
 0x21a   : > { %983 = vmatprep.subr.mxu0 %v2660_v21 }
 0x21b   : > { %984 = vmatpush2.msra.mxu0 %v2663_v22 }
 0x21c   : > { %985 = vmatprep.subr.mxu0 %v2666_v23 }
 0x21d   : > { %986 = vmatpush2.msra.mxu0 %v2669_v24 }
 0x21e   : > { %987 = vmatprep.subr.mxu0 %v2672_v25 }
 0x21f   : > { %988 = vmatpush2.msra.mxu0 %v2675_v26 }
 0x220   : > { %989 = vmatprep.subr.mxu0 %v2678_v27 }
 0x221   : > { %990 = vmatpush2.msra.mxu0 %v2681_v28 }
 0x222   : > { %991 = vmatprep.subr.mxu0 %v2684_v29 }
 0x223   : > { %992 = vmatpush2.msra.mxu0 %v2687_v30 }
 0x224   : > { %993 = vmatprep.subr.mxu0 %v2690_v31 }
 0x225   : > { %994 = vmatpush2.msra.mxu0 %v2693_v32 }
 0x226   : > { %995 = vmatprep.subr.mxu0 %v2696_v33 }
 0x227   : > { %996 = vmatpush2.msra.mxu0 %v2699_v35 }
 0x228   : > { %997 = vmatprep.subr.mxu0 %v2702_v36 }
 0x229   : > { %998 = vmatpush2.msra.mxu0 %v2705_v37 }
 0x22a   : > { %999 = vmatprep.subr.mxu0 %v2782_v40 }
 0x22b   : > { %1000 = vmatpush2.msra.mxu0 %v2784_v41 }
 0x22c   : > { %1001 = vmatprep.subr.mxu0 %v2790_v42 }
 0x22d   : > { %1002 = vmatpush2.msra.mxu0 %v2793_v43 }
 0x22e   : > { %1003 = vmatprep.subr.mxu0 %v2797_v44 }
 0x22f   : > { %1004 = vmatpush2.msra.mxu0 %v2799_v45 }
 0x230   : > { %1005 = vmatprep.subr.mxu0 %v2805_v46 }
 0x231   : > { %1006 = vmatpush2.msra.mxu0 %v2809_v47 }
 0x232   : > { %1007 = vmatprep.subr.mxu0 %v2813_v48  ;;  %v2836_v48 = vpop.permute.xlu0 %1271 }
 0x233   : > { %1008 = vmatpush2.msra.mxu0 %v2817_v49  ;;  %3607 = vst [vmem:[#allocation49_spill] sm:$0xff] %v2836_v48  ;;  %v2839_v49 = vld [vmem:[#allocation2 + $0x100] sm:$0xff] }
 0x234   : > { %1009 = vmatprep.subr.mxu0 %v2821_v50  ;;  %3608 = vst [vmem:[#allocation50_spill] sm:$0xff] %v2839_v49  ;;  %v3490_v50 = vlaneseq  ;;  %934 = vmatpush2.msra.mxu1 %v2839_v49 }
 0x235   : > { %1010 = vmatpush2.msra.mxu0 %v2825_v38  ;;  %1058 = vmatprep.subr.mxu1 %v2566_v51 }
 0x236   : > { %1011 = vmatprep.subr.mxu0 %v2829_v39  ;;  %v2849_v48 = vand.u32 127, %v3490_v50  ;;  %v1930_v39 = vld [vmem:[%s3461_s11 + $0x18] ss:$0 sm:$0xff]  ;;  %v1291_v38 = vpop.permute.xlu0 %1290 }
 0x237   : > { %1012 = vmatpush2.msra.mxu0 %v2831_v34  ;;  %v1289_v34 = vpop.permute.xlu1 %1288 }
 0x238   : > { %1013 = vmatprep.subr.mxu0 %v2833_v15  ;;  %3609 = vst [vmem:[#allocation51_spill] sm:$0xff] %v2849_v48  ;;  %vm1292_vm4 = vcmp.lt.s32.totalorder %v2849_v48, 111 }
 0x239   : > { %1014 = vmatpush2.msra.mxu0 %v2839_v49  ;;  %v2856_v47 = vsel %vm1292_vm4, %v1289_v34, %v1291_v38  ;;  %v1294_v15 = vsel %vm1292_vm4, %v1291_v38, %v1289_v34  ;;  %v3612_v34 = vld [vmem:[#allocation37_spill] sm:$0xff]  ;;  %v3622_v38 = vld [vmem:[#allocation47_spill] sm:$0xff] }
 0x23a   : > { %v1304_v46 = vmul.f32 %v1930_v39, %v1294_v15  ;;  %v3611_v15 = vld [vmem:[#allocation36_spill] sm:$0xff] }
 0x23b   : > { %v3623_v39 = vld [vmem:[#allocation48_spill] sm:$0xff] }
 0x23c   : > { %1931 = vmatprep.subr.msk.mxu0 %vm632_vm1, %v1304_v46  ;;  %v3618_v46 = vld [vmem:[#allocation43_spill] sm:$0xff] }
 0x2b2   : > { %v782_v49 = vpop.f32.mrf.mxu0 }
 0x2b4   : > { %v784_v45 = vpop.f32.mrf.mxu0 }
 0x2b5   : > { %v789_v50 = vcombine.low %v782_v49, %v784_v45  ;;  %v3617_v45 = vld [vmem:[#allocation42_spill] sm:$0xff]  ;;  %v3620_v49 = vld [vmem:[#allocation45_spill] sm:$0xff] }
 0x2b7   : > { %v791_v51 = vmul.f32 %v789_v50, %v2445_v13  ;;  %v3610_v13 = vld [vmem:[#allocation35_spill] sm:$0xff]  ;;  %v3621_v50 = vld [vmem:[#allocation46_spill] sm:$0xff] }
 0x2ba   : > { %v858_v44 = vpop.f32.mrf.mxu0 }
 0x2bc   : > { %v860_v43 = vpop.f32.mrf.mxu0 }
 0x2bd   : > { %v865_v42 = vcombine.low %v858_v44, %v860_v43  ;;  %v3615_v43 = vld [vmem:[#allocation40_spill] sm:$0xff]  ;;  %v3616_v44 = vld [vmem:[#allocation41_spill] sm:$0xff] }
 0x2bf   : > { %v2860_v41 = vmul.f32 %v865_v42, %v791_v51  ;;  %v3613_v51 = vld [vmem:[#allocation38_spill] sm:$0xff]  ;;  %v3614_v42 = vld [vmem:[#allocation39_spill] sm:$0xff] }
 0x2c1   : > { %v869_v48 = vcombine.high %v2860_v41, %v2860_v41 }
 0x2c3   : > { %935 = vmatprep.mubr.f32.mxu1 %v869_v48  ;;  %v3619_v48 = vld [vmem:[#allocation44_spill] sm:$0xff] }
 0x2c4   : > { %936 = vmatmul.mubr.f32.vlgmr.msra.gmra.mxu1 %v2860_v41 }
 0x2c5   : > { %1059 = vmatpush1.msra.mxu1 %v2568_v52 }
 0x2c6   : > { %1060 = vmatprep.subr.mxu1 %v2570_v53 }
 0x2c7   : > { %1061 = vmatpush1.msra.mxu1 %v2573_v54 }
 0x2c8   : > { %1062 = vmatprep.subr.mxu1 %v2576_v55 }
 0x2c9   : > { %1063 = vmatpush1.msra.mxu1 %v2579_v56 }
 0x2ca   : > { %1064 = vmatprep.subr.mxu1 %v2582_v57 }
 0x2cb   : > { %1065 = vmatpush1.msra.mxu1 %v2585_v58 }
 0x2cc   : > { %1066 = vmatprep.subr.mxu1 %v2588_v59 }
 0x2cd   : > { %1067 = vmatpush1.msra.mxu1 %v2591_v60 }
 0x2ce   : > { %1068 = vmatprep.subr.mxu1 %v2594_v61 }
 0x2cf   : > { %1069 = vmatpush1.msra.mxu1 %v2597_v62 }
 0x2d0   : > { %1070 = vmatprep.subr.mxu1 %v2600_v63 }
 0x2d1   : > { %1071 = vmatpush1.msra.mxu1 %v2603_v0 }
 0x2d2   : > { %1072 = vmatprep.subr.mxu1 %v2606_v1 }
 0x2d3   : > { %1073 = vmatpush1.msra.mxu1 %v2609_v2 }
 0x2d4   : > { %1074 = vmatprep.subr.mxu1 %v2612_v3 }
 0x2d5   : > { %1075 = vmatpush1.msra.mxu1 %v2615_v4 }
 0x2d6   : > { %1076 = vmatprep.subr.mxu1 %v2618_v5 }
 0x2d7   : > { %1077 = vmatpush1.msra.mxu1 %v2621_v6 }
 0x2d8   : > { %1078 = vmatprep.subr.mxu1 %v2624_v7 }
 0x2d9   : > { %1079 = vmatpush1.msra.mxu1 %v2627_v8 }
 0x2da   : > { %1080 = vmatprep.subr.mxu1 %v2630_v9 }
 0x2db   : > { %1081 = vmatpush1.msra.mxu1 %v2633_v10 }
 0x2dc   : > { %1082 = vmatprep.subr.mxu1 %v2636_v11 }
 0x2dd   : > { %1083 = vmatpush1.msra.mxu1 %v2639_v12 }
 0x2de   : > { %1084 = vmatprep.subr.mxu1 %v2642_v14 }
 0x2df   : > { %1085 = vmatpush1.msra.mxu1 %v2645_v16 }
 0x2e0   : > { %1086 = vmatprep.subr.mxu1 %v2648_v17 }
 0x2e1   : > { %1087 = vmatpush1.msra.mxu1 %v2651_v18 }
 0x2e2   : > { %1088 = vmatprep.subr.mxu1 %v2654_v19 }
 0x2e3   : > { %1089 = vmatpush1.msra.mxu1 %v2657_v20 }
 0x2e4   : > { %1090 = vmatprep.subr.mxu1 %v2660_v21 }
 0x2e5   : > { %1091 = vmatpush2.msra.mxu1 %v2663_v22 }
 0x2e6   : > { %1092 = vmatprep.subr.mxu1 %v2666_v23 }
 0x2e7   : > { %1093 = vmatpush2.msra.mxu1 %v2669_v24 }
 0x2e8   : > { %1094 = vmatprep.subr.mxu1 %v2672_v25 }
 0x2e9   : > { %1095 = vmatpush2.msra.mxu1 %v2675_v26 }
 0x2ea   : > { %1096 = vmatprep.subr.mxu1 %v2678_v27 }
 0x2eb   : > { %1097 = vmatpush2.msra.mxu1 %v2681_v28 }
 0x2ec   : > { %1098 = vmatprep.subr.mxu1 %v2684_v29 }
 0x2ed   : > { %1099 = vmatpush2.msra.mxu1 %v2687_v30  ;;  %v1929_v30 = vld [vmem:[%s3461_s11 + $0x10] ss:$0 sm:$0xff] }
 0x2ee   : > { %1100 = vmatprep.subr.mxu1 %v2690_v31  ;;  %v1303_v24 = vmul.f32 %v1929_v30, %v2856_v47 }
 0x2ef   : > { %1101 = vmatpush2.msra.mxu1 %v2693_v32 }
 0x2f0   : > { %1102 = vmatprep.subr.mxu1 %v2696_v33 }
 0x2f1   : > { %1103 = vmatpush2.msra.mxu1 %v2699_v35 }
 0x2f2   : > { %1104 = vmatprep.subr.mxu1 %v2702_v36  ;;  %v3629_v36 = vld [vmem:[#allocation49_spill] sm:$0xff] }
 0x2f3   : > { %1105 = vmatpush2.msra.mxu1 %v2705_v37 }
 0x2f4   : > { %1106 = vmatprep.subr.mxu1 %v2782_v40 }
 0x2f5   : > { %1107 = vmatpush2.msra.mxu1 %v3610_v13  ;;  %v3628_v13 = vld [vmem:[#allocation51_spill] sm:$0xff] }
 0x2f6   : > { %1108 = vmatprep.subr.mxu1 %v3611_v15  ;;  %vm1275_vm5 = vcmp.lt.s32.totalorder %v3628_v13, 112  ;;  %vm1241_vm6 = vcmp.lt.s32.totalorder %v3628_v13, 127  ;;  %vm1258_vm7 = vcmp.lt.s32.totalorder %v3628_v13, 113  ;;  %vm1224_vm8 = vcmp.lt.s32.totalorder %v3628_v13, 1 }
 0x2f7   : > { %1109 = vmatpush2.msra.mxu1 %v3612_v34  ;;  %vm1190_vm9 = vcmp.lt.s32.totalorder %v3628_v13, 16  ;;  %vm1207_vm10 = vcmp.lt.s32.totalorder %v3628_v13, 15  ;;  %vm1173_vm11 = vcmp.lt.s32.totalorder %v3628_v13, 17 }
 0x2f8   : > { %1110 = vmatprep.subr.mxu1 %v3613_v51  ;;  %v3624_v51 = vld [vmem:[#allocation50_spill] sm:$0xff] }
 0x2f9   : > { %1111 = vmatpush2.msra.mxu1 %v3614_v42  ;;  %v3625_v42 = vld [vmem:[#allocation11_spill] sm:$0xff] }
 0x2fa   : > { %1112 = vmatprep.subr.mxu1 %v3615_v43 }
 0x2fb   : > { %1113 = vmatpush2.msra.mxu1 %v3616_v44 }
 0x2fc   : > { %1114 = vmatprep.subr.mxu1 %v3617_v45  ;;  %v432_v45 = vld [vmem:[%s3455_s5] sm:$0xf] }
 0x2fd   : > { %1115 = vmatpush2.msra.mxu1 %v3618_v46  ;;  %1031 = vperm.xlu1 %2053, %v432_v45   ;;  %v2942_v45 = vld [vmem:[%s3461_s11] sm:$0xff] }
 0x2fe   : > { %1116 = vmatprep.subr.mxu1 %v3619_v48  ;;  %v431_v48 = vld [vmem:[%s3454_s4] sm:$0xf] }
 0x2ff   : > { %1117 = vmatpush2.msra.mxu1 %v3620_v49  ;;  %v1238_v49 = vpop.permute.xlu1 %1237 }
 0x300   : > { %1118 = vmatprep.subr.mxu1 %v3621_v50  ;;  %v1240_v50 = vpop.permute.xlu0 %1239 }
 0x301   : > { %1119 = vmatpush2.msra.mxu1 %v3622_v38  ;;  %1339 = vperm.xlu1 %2053, %v431_v48   ;;  %v2947_v48 = vld [vmem:[%s3461_s11 + $0x8] sm:$0xff]  ;;  %v1242_v25 = vsel %vm1241_vm6, %v1238_v49, %v1240_v50 }
 0x302   : > { %1120 = vmatprep.subr.mxu1 %v3623_v39  ;;  %v3626_v39 = vlaneseq }
 0x303   : > { %1121 = vmatpush2.msra.mxu1 %v3624_v51  ;;  %v1274_v46 = vpop.permute.xlu1 %1273 }
 0x304   : > { %1503 = vmatprep.subr.mxu1 %v3625_v42  ;;  %v1257_v38 = vpop.permute.xlu0 %1256  ;;  %v2936_v43 = vshrl.u32 %v3626_v39, 7  ;;  %v1276_v35 = vsel %vm1275_vm5, %v3629_v36, %v1274_v46  ;;  %v1277_v33 = vsel %vm1275_vm5, %v1274_v46, %v3629_v36  ;;  %v1243_v36 = vsel %vm1241_vm6, %v1240_v50, %v1238_v49 }
 0x306   : > { %3627 = vst [vmem:[#allocation11_spill] sm:$0xff] %v2936_v43  ;;  %v1280_v34 = vsub.s32 7, %v2936_v43  ;;  %v1246_v40 = vsub.s32 5, %v2936_v43  ;;  %v1263_v29 = vsub.s32 6, %v2936_v43  ;;  %v1229_v46 = vsub.s32 3, %v2936_v43 }
 0x307   : > { %v1255_v44 = vpop.permute.xlu1 %1254 }
 0x308   : > { %v1223_v15 = vpop.permute.xlu0 %1222  ;;  %v1281_v39 = vrot.slane %v2942_v45, %v1280_v34  ;;  %v1285_v37 = vrot.slane %v2947_v48, %v1280_v34  ;;  %v1247_v28 = vrot.slane %v2942_v45, %v1246_v40  ;;  %v1251_v27 = vrot.slane %v2947_v48, %v1246_v40 }
 0x309   : > { %v1264_v22 = vrot.slane %v2942_v45, %v1263_v29  ;;  %v1268_v21 = vrot.slane %v2947_v48, %v1263_v29  ;;  %v1234_v20 = vrot.slane %v2947_v48, %v1229_v46  ;;  %v1212_v29 = vsub.s32 2, %v2936_v43 }
 0x30a   : > { %v2962_v26 = vmul.f32 %v1281_v39, %v1276_v35  ;;  %v2964_v34 = vmul.f32 %v1285_v37, %v1277_v33  ;;  %v1195_v35 = vsub.s32 1, %v2936_v43  ;;  %v2973_v33 = vmul.f32 %v1247_v28, %v1242_v25 }
 0x30b   : > { %v1221_v51 = vpop.permute.xlu1 %1220  ;;  %v1253_v37 = vmul.f32 %v1251_v27, %v1243_v36  ;;  %v1260_v19 = vsel %vm1258_vm7, %v1257_v38, %v1255_v44  ;;  %v1230_v25 = vrot.slane %v2942_v45, %v1229_v46  ;;  %v1259_v36 = vsel %vm1258_vm7, %v1255_v44, %v1257_v38 }
 0x30c   : > { %v1189_v31 = vpop.permute.xlu0 %1188  ;;  %v1325_v49 = vrot.slane %v2962_v26, 4  ;;  %v1326_v50 = vrot.slane %v2964_v34, 4  ;;  %v1225_v27 = vsel %vm1224_vm8, %v1221_v51, %v1223_v15  ;;  %v1226_v26 = vsel %vm1224_vm8, %v1223_v15, %v1221_v51 }
 0x30d   : > { %v1178_v34 = vsub.s32 0, %v2936_v43  ;;  %v1196_v46 = vrot.slane %v2942_v45, %v1195_v35  ;;  %v1236_v15 = vmul.f32 %v1234_v20, %v1225_v27  ;;  %v1235_v16 = vmul.f32 %v1230_v25, %v1226_v26 }
 0x30e   : > { %v1213_v43 = vrot.slane %v2942_v45, %v1212_v29 }
 0x30f   : > { %v1187_v32 = vpop.permute.xlu1 %1186  ;;  %v1183_v20 = vrot.slane %v2947_v48, %v1178_v34 }
 0x310   : > { %v1206_v47 = vpop.permute.xlu0 %1205  ;;  %v1192_v18 = vsel %vm1190_vm9, %v1189_v31, %v1187_v32 }
 0x311   : > { %v1201_v27 = vmul.f32 %v1196_v46, %v1192_v18  ;;  %v3635_v46 = vld [vmem:[#allocation14_spill] sm:$0xff] }
 0x313   : > { %v1204_v40 = vpop.permute.xlu1 %1203 }
 0x314   : > { %v1208_v44 = vsel %vm1207_vm10, %v1204_v40, %v1206_v47  ;;  %v1170_v38 = vpop.permute.xlu0 %1169 }
 0x317   : > { %v1168_v51 = vpop.permute.xlu1 %1167 }
 0x318   : > { %v1175_v26 = vsel %vm1173_vm11, %v1170_v38, %v1168_v51 }
 0x384   : > { %v937_v23 = vpop.f32.mrf.mxu1 }
 0x386   : > { %v939_v30 = vpop.f32.mrf.mxu1 }
 0x387   : > { %v944_v39 = vcombine.low %v937_v23, %v939_v30  ;;  %v1200_v23 = vrot.slane %v2947_v48, %v1195_v35  ;;  %v1191_v30 = vsel %vm1190_vm9, %v1187_v32, %v1189_v31  ;;  %v1209_v31 = vsel %vm1207_vm10, %v1206_v47, %v1204_v40  ;;  %v3632_v47 = vld [vmem:[#allocation10_spill] sm:$0xff] }
 0x388   : > { %v1269_v32 = vmul.f32 %v1264_v22, %v1259_v36  ;;  %v3631_v40 = vmov 0.0   ;;  %v3634_v36 = vld [vmem:[#allocation13_spill] sm:$0xff] }
 0x389   : > { %v2988_v28 = vsub.f32 %v2860_v41, %v944_v39  ;;  %v1217_v41 = vrot.slane %v2947_v48, %v1212_v29  ;;  %v1270_v39 = vmul.f32 %v1268_v21, %v1260_v19  ;;  %v1202_v35 = vmul.f32 %v1200_v23, %v1191_v30 }
 0x38a   : > { %v1174_v19 = vsel %vm1173_vm11, %v1168_v51, %v1170_v38  ;;  %v1320_v21 = vrot.slane %v1253_v37, 4  ;;  %v1314_v29 = vrot.slane %v1236_v15, 4  ;;  %v1319_v23 = vrot.slane %v2973_v33, 4  ;;  %v3636_v15 = vld [vmem:[#allocation15_spill] sm:$0xff]  ;;  %v3638_v51 = vld [vmem:[#allocation17_spill] sm:$0xff]  ;;  %v3641_v38 = vld [vmem:[#allocation20_spill] sm:$0xff] }
 0x38b   : > { %3630 = vst [vmem:[#allocation51_spill] sm:$0xff] %v2988_v28  ;;  %v947_v17 = vmul.f32 %v2988_v28, %v2988_v28  ;;  %v1179_v28 = vrot.slane %v2942_v45, %v1178_v34  ;;  %v1219_v25 = vmul.f32 %v1217_v41, %v1208_v44  ;;  %v1313_v30 = vrot.slane %v1235_v16, 4  ;;  %v3633_v34 = vld [vmem:[#allocation12_spill] sm:$0xff]  ;;  %v3640_v44 = vld [vmem:[#allocation19_spill] sm:$0xff] }
 0x38c   : > { %v1218_v48 = vmul.f32 %v1213_v43, %v1209_v31  ;;  %v1308_v22 = vrot.slane %v1202_v35, 4  ;;  %v1336_v18 = vsel %vm632_vm1, %v1270_v39, %v1326_v50  ;;  %v1185_v45 = vmul.f32 %v1183_v20, %v1174_v19  ;;  %v3020_v43 = vld [vmem:[%s2433_s30] sm:$0xff]  ;;  %v3639_v39 = vld [vmem:[#allocation18_spill] sm:$0xff]  ;;  %v3642_v35 = vld [vmem:[#allocation21_spill] sm:$0xff]  ;;  %s419_s30 = sand.u32 1, %s2241_s22  }
 0x38d   : > { %v949_v14 = vcombine.high %v947_v17, %v947_v17  ;;  %v1307_v37 = vrot.slane %v1201_v27, 4  ;;  %v1184_v13 = vmul.f32 %v1179_v28, %v1175_v26  ;;  %v1334_v16 = vsel %vm632_vm1, %v3632_v47, %v1320_v21  ;;  %v430_v28 = vld [vmem:[%s3453_s3] sm:$0xf]  ;;  %v3643_v31 = vld [vmem:[#allocation22_spill] sm:$0xff]  ;;  %v3644_v20 = vld [vmem:[#allocation23_spill] sm:$0xff]  ;;  %s1921_s10 = sshll.u32 %s419_s30, 3 }
 0x38e   : > { %v1331_v33 = vsel %vm632_vm1, %v1218_v48, %v1313_v30  ;;  %v1330_v50 = vsel %vm632_vm1, %v1185_v45, %v1308_v22  ;;  %v3637_v41 = vld [vmem:[#allocation16_spill] sm:$0xff]  ;;  %v3646_v27 = vld [vmem:[#allocation25_spill] sm:$0xff]  ;;  %v3647_v19 = vld [vmem:[#allocation26_spill] sm:$0xff]  ;;  %s421_s17 = scalar_lea.vmem [#allocation5], %s1921_s10  ;;  %s1830_s18 = scalar_lea.sflag [#allocation4], %s419_s30 }
 0x38f   : > { %1015 = vmatprep.mubr.f32.mxu0 %v949_v14  ;;  %v1335_v14 = vsel %vm632_vm1, %v1269_v32, %v1325_v49  ;;  %v1329_v49 = vsel %vm632_vm1, %v1184_v13, %v1307_v37  ;;  %v3645_v32 = vld [vmem:[#allocation24_spill] sm:$0xff]  ;;  %v3648_v21 = vld [vmem:[#allocation27_spill] sm:$0xff]  ;;  %v3651_v26 = vld [vmem:[#allocation30_spill] sm:$0xff]  ;;  %s1844_s28 = sshll.u32 %s421_s17, 4  ;;  %s1845_s28 = int_to_ptr.vmem [resolvable:$true] %s1844_s28 }
 0x390   : > { %1016 = vmatmul.mubr.f32.vlgmr.msra.gmra.mxu0 %v947_v17  ;;  %v1332_v17 = vsel %vm632_vm1, %v1219_v25, %v1314_v29  ;;  %v3649_v29 = vld [vmem:[#allocation28_spill] sm:$0xff]  ;;  %v3650_v25 = vld [vmem:[#allocation29_spill] sm:$0xff]  ;;  %v3655_v22 = vld [vmem:[#allocation34_spill] sm:$0xff]  ;;  %s2185_s15 = scalar_lea.vmem %s1845_s28, 128  ;;  %p2192_p11 = scmp.lt.s32.totalorder %s1845_s28, %s2190_s26 }
 0x391   : > { %1932 = vmatpush1.msk.msra.mxu0 %vm632_vm1, %v1303_v24  ;;  %1416 = vmatprep.mubr.f32.mxu0 %v3631_v40  ;;  %v1333_v24 = vsel %vm632_vm1, %v3020_v43, %v1319_v23  ;;  %v3652_v23 = vld [vmem:[#allocation31_spill] sm:$0xff]  ;;  %v3653_v30 = vld [vmem:[#allocation32_spill] sm:$0xff]  ;;  %v3654_v48 = vld [vmem:[#allocation33_spill] sm:$0xff]  ;;  %p2186_p6 = scmp.ne.s32.totalorder %s1845_s28, %s2185_s15  ;;  %p2193_p12 = scmp.lt.s32.totalorder %s2191_s25, %s2185_s15 }
 0x392   : > { %1376 = vmatprep.subr.mxu0 %v1336_v18  ;;  %v3656_v18 = vld [vmem:[#allocation35_spill] sm:$0xff]  ;;  %v3657_v45 = vld [vmem:[#allocation36_spill] sm:$0xff]  ;;  %v3658_v40 = vld [vmem:[#allocation37_spill] sm:$0xff] }
 0x393   : > { %1377 = vmatpush1.msra.mxu0 %v1335_v14  ;;  %v3659_v37 = vld [vmem:[#allocation38_spill] sm:$0xff]  ;;  %v3660_v14 = vld [vmem:[#allocation39_spill] sm:$0xff]  ;;  %v3661_v13 = vld [vmem:[#allocation40_spill] sm:$0xff]  ;;  %p2187_p9 = pnand %p2186_p6, %p2370_p5  ;;  %p2194_p13 = por %p2193_p12, %p2192_p11 }
 0x394   : > { %1378 = vmatprep.subr.mxu0 %v1334_v16  ;;  %v3663_v16 = vld [vmem:[#allocation42_spill] sm:$0xff] }
 0x395   : > { %1379 = vmatpush1.msra.mxu0 %v1333_v24  ;;  %v3665_v24 = vld [vmem:[#allocation44_spill] sm:$0xff]  ;;  %p2188_p10 = pneg %p2187_p9 }
 0x396   : > { %1380 = vmatprep.subr.mxu0 %v1332_v17  ;;  %v3664_v17 = vld [vmem:[#allocation43_spill] sm:$0xff] }
 0x397   : > { %1381 = vmatpush1.msra.mxu0 %v1331_v33  ;;  %v3666_v33 = vld [vmem:[#allocation45_spill] sm:$0xff]  ;;  %p2195_p0 = pnand %p2194_p13, %p2188_p10 }
 0x398   : > { %1382 = vmatprep.subr.mxu0 %v1330_v50  ;;  %v3667_v50 = vld [vmem:[#allocation46_spill] sm:$0xff] }
 0x399   : > { %1383 = vmatpush1.msra.mxu0 %v1329_v49  ;;  %v3668_v49 = vld [vmem:[#allocation47_spill] sm:$0xff] }
 0x39a   : > { %1423 = vmatprep.subr.mxu0 %v3625_v42  ;;  %1933 = vmatmul.mubr.msk.f32.vlgmr.msra.gmra.mxu0 %vm1342_vm12, %v430_v28  ;;  %v3669_v28 = vld [vmem:[#allocation48_spill] sm:$0xff] }
 0x39b   : > { %1424 = vmatpush1.msra.mxu0 %v2568_v52  ;;  %1487 = vmatprep.mubr.f32.mxu0 %v3632_v47  ;;  %v3662_v47 = vld [vmem:[#allocation41_spill] sm:$0xff] }
 0x39c   : > { %1425 = vmatprep.subr.mxu0 %v2570_v53 }
 0x39d   : > { %1426 = vmatpush1.msra.mxu0 %v2573_v54 }
 0x39e   : > { %1427 = vmatprep.subr.mxu0 %v2576_v55 }
 0x39f   : > { %1428 = vmatpush1.msra.mxu0 %v2579_v56 }
 0x3a0   : > { %1429 = vmatprep.subr.mxu0 %v2582_v57 }
 0x3a1   : > { %1430 = vmatpush1.msra.mxu0 %v2585_v58 }
 0x3a2   : > { %1431 = vmatprep.subr.mxu0 %v2588_v59 }
 0x3a3   : > { %1432 = vmatpush1.msra.mxu0 %v2591_v60 }
 0x3a4   : > { %1433 = vmatprep.subr.mxu0 %v2594_v61 }
 0x3a5   : > { %1434 = vmatpush1.msra.mxu0 %v2597_v62 }
 0x3a6   : > { %1435 = vmatprep.subr.mxu0 %v2600_v63 }
 0x3a7   : > { %1436 = vmatpush1.msra.mxu0 %v2603_v0 }
 0x3a8   : > { %1437 = vmatprep.subr.mxu0 %v2606_v1 }
 0x3a9   : > { %1438 = vmatpush1.msra.mxu0 %v2609_v2 }
 0x3aa   : > { %1439 = vmatprep.subr.mxu0 %v2612_v3 }
 0x3ab   : > { %1440 = vmatpush1.msra.mxu0 %v2615_v4 }
 0x3ac   : > { %1441 = vmatprep.subr.mxu0 %v2618_v5 }
 0x3ad   : > { %1442 = vmatpush1.msra.mxu0 %v2621_v6 }
 0x3ae   : > { %1443 = vmatprep.subr.mxu0 %v2624_v7 }
 0x3af   : > { %1444 = vmatpush1.msra.mxu0 %v2627_v8 }
 0x3b0   : > { %1445 = vmatprep.subr.mxu0 %v2630_v9 }
 0x3b1   : > { %1446 = vmatpush1.msra.mxu0 %v2633_v10 }
 0x3b2   : > { %1447 = vmatprep.subr.mxu0 %v2636_v11 }
 0x3b3   : > { %1448 = vmatpush1.msra.mxu0 %v2639_v12 }
 0x3b4   : > { %1449 = vmatprep.subr.mxu0 %v3633_v34 }
 0x3b5   : > { %1450 = vmatpush1.msra.mxu0 %v3634_v36 }
 0x3b6   : > { %1451 = vmatprep.subr.mxu0 %v3635_v46 }
 0x3b7   : > { %1452 = vmatpush1.msra.mxu0 %v3636_v15 }
 0x3b8   : > { %1453 = vmatprep.subr.mxu0 %v3637_v41 }
 0x3b9   : > { %1454 = vmatpush1.msra.mxu0 %v3638_v51 }
 0x3ba   : > { %1455 = vmatprep.subr.mxu0 %v3639_v39 }
 0x3bb   : > { %1456 = vmatpush2.msra.mxu0 %v3640_v44 }
 0x3bc   : > { %1457 = vmatprep.subr.mxu0 %v3641_v38 }
 0x3bd   : > { %1458 = vmatpush2.msra.mxu0 %v3642_v35 }
 0x3be   : > { %1459 = vmatprep.subr.mxu0 %v3643_v31 }
 0x3bf   : > { %1460 = vmatpush2.msra.mxu0 %v3644_v20 }
 0x3c0   : > { %1461 = vmatprep.subr.mxu0 %v3645_v32 }
 0x3c1   : > { %1462 = vmatpush2.msra.mxu0 %v3646_v27 }
 0x3c2   : > { %1463 = vmatprep.subr.mxu0 %v3647_v19 }
 0x3c3   : > { %1464 = vmatpush2.msra.mxu0 %v3648_v21 }
 0x3c4   : > { %1465 = vmatprep.subr.mxu0 %v3649_v29 }
 0x3c5   : > { %1466 = vmatpush2.msra.mxu0 %v3650_v25 }
 0x3c6   : > { %1467 = vmatprep.subr.mxu0 %v3651_v26 }
 0x3c7   : > { %1468 = vmatpush2.msra.mxu0 %v3652_v23 }
 0x3c8   : > { %1469 = vmatprep.subr.mxu0 %v3653_v30 }
 0x3c9   : > { %1470 = vmatpush2.msra.mxu0 %v3654_v48 }
 0x3ca   : > { %1471 = vmatprep.subr.mxu0 %v3655_v22 }
 0x3cb   : > { %1472 = vmatpush2.msra.mxu0 %v3656_v18 }
 0x3cc   : > { %1473 = vmatprep.subr.mxu0 %v3657_v45 }
 0x3cd   : > { %1474 = vmatpush2.msra.mxu0 %v3658_v40 }
 0x3ce   : > { %1475 = vmatprep.subr.mxu0 %v3659_v37  ;;  %v3670_v37 = vld [vmem:[#allocation50_spill] sm:$0xff] }
 0x3cf   : > { %1476 = vmatpush2.msra.mxu0 %v3660_v14 }
 0x3d0   : > { %1477 = vmatprep.subr.mxu0 %v3661_v13 }
 0x3d1   : > { %1478 = vmatpush2.msra.mxu0 %v3662_v47 }
 0x3d2   : > { %1479 = vmatprep.subr.mxu0 %v3663_v16 }
 0x3d3   : > { %1480 = vmatpush2.msra.mxu0 %v3664_v17 }
 0x3d4   : > { %1481 = vmatprep.subr.mxu0 %v3665_v24 }
 0x3d5   : > { %1482 = vmatpush2.msra.mxu0 %v3666_v33 }
 0x3d6   : > { %1483 = vmatprep.subr.mxu0 %v3667_v50 }
 0x3d7   : > { %1484 = vmatpush2.msra.mxu0 %v3668_v49 }
 0x3d8   : > { %1485 = vmatprep.subr.mxu0 %v3669_v28 }
 0x3d9   : > { %1486 = vmatpush2.msra.mxu0 %v3670_v37 }
 0x3da   : > { %1488 = vmatmul.mubr.f32.vlgmr.msra.gmra.mxu0 %v3020_v43  ;;  %1586 = vmatprep.subr.mxu0 %v3625_v42  ;;  %v3185_v42 = vld [vmem:[#allocation2 + $0xd8] sm:$0xff] }
 0x3db   : > { %1587 = vmatpush1.msra.mxu0 %v2568_v52  ;;  %v3671_v52 = vld [vmem:[#allocation38_spill] sm:$0xff] }
 0x3dc   : > { %1588 = vmatprep.subr.mxu0 %v2570_v53 }
 0x3dd   : > { %1589 = vmatpush1.msra.mxu0 %v2573_v54 }
 0x3de   : > { %1590 = vmatprep.subr.mxu0 %v2576_v55 }
 0x3df   : > { %1591 = vmatpush1.msra.mxu0 %v2579_v56 }
 0x3e0   : > { %1592 = vmatprep.subr.mxu0 %v2582_v57  ;;  %v2265_v57 = vmov 839922192  }
 0x3e1   : > { %1593 = vmatpush1.msra.mxu0 %v2585_v58  ;;  %v1034_v58 = vunpack.c.l.s4 %v2265_v57  ;;  %v3266_v57 = vld [vmem:[#allocation2] sm:$0xff] }
 0x3e2   : > { %1594 = vmatprep.subr.mxu0 %v2588_v59 }
 0x3e3   : > { %1595 = vmatpush1.msra.mxu0 %v2591_v60  ;;  %v1035_v59 = vunpack.c.0.s8 %v1034_v58  ;;  %v3269_v58 = vld [vmem:[#allocation2 + $0x1f8] sm:$0xff] }
 0x3e4   : > { %1596 = vmatprep.subr.mxu0 %v2594_v61  ;;  %v3672_v61 = vld [vmem:[#allocation11_spill] sm:$0xff] }
 0x3e5   : > { %1597 = vmatpush1.msra.mxu0 %v2597_v62  ;;  %v1038_v62 = vsub.s32 %v1035_v59, %v3672_v61  ;;  %v3272_v59 = vld [vmem:[#allocation2 + $0x1f0] sm:$0xff]  ;;  %v3278_v61 = vld [vmem:[#allocation2 + $0x1e0] sm:$0xff] }
 0x3e6   : > { %1598 = vmatprep.subr.mxu0 %v2600_v63 }
 0x3e7   : > { %1599 = vmatpush1.msra.mxu0 %v2603_v0  ;;  %v1032_v0 = vpop.permute.xlu1 %1031 }
 0x3e8   : > { %1600 = vmatprep.subr.mxu0 %v2606_v1 }
 0x3e9   : > { %1601 = vmatpush1.msra.mxu0 %v2609_v2  ;;  %v3161_v2 = vrot.slane %v1032_v0, %v1038_v62 }
 0x3ea   : > { %1602 = vmatprep.subr.mxu0 %v2612_v3  ;;  %v1045_v3 = vpop.permute.xlu0 %1044 }
 0x3eb   : > { %1603 = vmatpush1.msra.mxu0 %v2615_v4  ;;  %3673 = vst [vmem:[#allocation49_spill] sm:$0xff] %v3161_v2  ;;  %v3674_v4 = vld [vmem:[#allocation51_spill] sm:$0xff] }
 0x3ec   : > { %1604 = vmatprep.subr.mxu0 %v2618_v5 }
 0x3ed   : > { %1605 = vmatpush1.msra.mxu0 %v2621_v6  ;;  %v3164_v6 = vrot.slane %v1045_v3, %v1038_v62  ;;  %v3281_v62 = vld [vmem:[#allocation2 + $0x1d8] sm:$0xff]  ;;  %v3292_v3 = vld [vmem:[#allocation2 + $0x1c0] sm:$0xff] }
 0x3ee   : > { %1606 = vmatprep.subr.mxu0 %v2624_v7 }
 0x3ef   : > { %1607 = vmatpush1.msra.mxu0 %v2627_v8  ;;  %3675 = vst [vmem:[#allocation10_spill] sm:$0xff] %v3164_v6 }
 0x3f0   : > { %1608 = vmatprep.subr.mxu0 %v2630_v9 }
 0x3f1   : > { %1609 = vmatpush1.msra.mxu0 %v2633_v10  ;;  %v3176_v10 = vld [vmem:[#allocation2 + $0xf0] sm:$0xff] }
 0x3f2   : > { %1610 = vmatprep.subr.mxu0 %v2636_v11  ;;  %v3179_v11 = vld [vmem:[#allocation2 + $0xe8] sm:$0xff] }
 0x3f3   : > { %1611 = vmatpush1.msra.mxu0 %v2639_v12  ;;  %v3182_v12 = vld [vmem:[#allocation2 + $0xe0] sm:$0xff] }
 0x3f4   : > { %1612 = vmatprep.subr.mxu0 %v3633_v34  ;;  %v3188_v34 = vld [vmem:[#allocation2 + $0xd0] sm:$0xff] }
 0x3f5   : > { %1613 = vmatpush1.msra.mxu0 %v3634_v36  ;;  %v3191_v36 = vld [vmem:[#allocation2 + $0xc8] sm:$0xff] }
 0x3f6   : > { %1614 = vmatprep.subr.mxu0 %v3635_v46  ;;  %v3194_v46 = vld [vmem:[#allocation2 + $0xc0] sm:$0xff] }
 0x3f7   : > { %1615 = vmatpush1.msra.mxu0 %v3636_v15  ;;  %v3197_v15 = vld [vmem:[#allocation2 + $0xb8] sm:$0xff] }
 0x3f8   : > { %1616 = vmatprep.subr.mxu0 %v3637_v41  ;;  %v3200_v41 = vld [vmem:[#allocation2 + $0xb0] sm:$0xff] }
 0x3f9   : > { %1617 = vmatpush1.msra.mxu0 %v3638_v51  ;;  %v3203_v51 = vld [vmem:[#allocation2 + $0xa8] sm:$0xff] }
 0x3fa   : > { %1618 = vmatprep.subr.mxu0 %v3639_v39  ;;  %v3206_v39 = vld [vmem:[#allocation2 + $0xa0] sm:$0xff] }
 0x3fb   : > { %1619 = vmatpush2.msra.mxu0 %v3640_v44  ;;  %v3209_v44 = vld [vmem:[#allocation2 + $0x98] sm:$0xff] }
 0x3fc   : > { %1620 = vmatprep.subr.mxu0 %v3641_v38  ;;  %v3212_v38 = vld [vmem:[#allocation2 + $0x90] sm:$0xff] }
 0x3fd   : > { %1621 = vmatpush2.msra.mxu0 %v3642_v35  ;;  %v3215_v35 = vld [vmem:[#allocation2 + $0x88] sm:$0xff] }
 0x3fe   : > { %1622 = vmatprep.subr.mxu0 %v3643_v31  ;;  %v3218_v31 = vld [vmem:[#allocation2 + $0x80] sm:$0xff] }
 0x3ff   : > { %1623 = vmatpush2.msra.mxu0 %v3644_v20  ;;  %v3221_v20 = vld [vmem:[#allocation2 + $0x78] sm:$0xff] }
 0x400   : > { %1624 = vmatprep.subr.mxu0 %v3645_v32  ;;  %v3224_v32 = vld [vmem:[#allocation2 + $0x70] sm:$0xff] }
 0x401   : > { %1625 = vmatpush2.msra.mxu0 %v3646_v27  ;;  %v3227_v27 = vld [vmem:[#allocation2 + $0x68] sm:$0xff] }
 0x402   : > { %1626 = vmatprep.subr.mxu0 %v3647_v19  ;;  %v3230_v19 = vld [vmem:[#allocation2 + $0x60] sm:$0xff] }
 0x403   : > { %1627 = vmatpush2.msra.mxu0 %v3648_v21  ;;  %v3233_v21 = vld [vmem:[#allocation2 + $0x58] sm:$0xff] }
 0x404   : > { %1628 = vmatprep.subr.mxu0 %v3649_v29  ;;  %v3236_v29 = vld [vmem:[#allocation2 + $0x50] sm:$0xff] }
 0x405   : > { %1629 = vmatpush2.msra.mxu0 %v3650_v25  ;;  %v3239_v25 = vld [vmem:[#allocation2 + $0x48] sm:$0xff] }
 0x406   : > { %1630 = vmatprep.subr.mxu0 %v3651_v26  ;;  %v3242_v26 = vld [vmem:[#allocation2 + $0x40] sm:$0xff] }
 0x407   : > { %1631 = vmatpush2.msra.mxu0 %v3652_v23  ;;  %v3245_v23 = vld [vmem:[#allocation2 + $0x38] sm:$0xff] }
 0x408   : > { %1632 = vmatprep.subr.mxu0 %v3653_v30  ;;  %v3248_v30 = vld [vmem:[#allocation2 + $0x30] sm:$0xff] }
 0x409   : > { %1633 = vmatpush2.msra.mxu0 %v3654_v48  ;;  %v3251_v48 = vld [vmem:[#allocation2 + $0x28] sm:$0xff] }
 0x40a   : > { %1634 = vmatprep.subr.mxu0 %v3655_v22 }
 0x40b   : > { %1635 = vmatpush2.msra.mxu0 %v3656_v18 }
 0x40c   : > { %1636 = vmatprep.subr.mxu0 %v3657_v45 }
 0x40d   : > { %1637 = vmatpush2.msra.mxu0 %v3658_v40 }
 0x40e   : > { %1638 = vmatprep.subr.mxu0 %v3671_v52 }
 0x40f   : > { %1639 = vmatpush2.msra.mxu0 %v3660_v14 }
 0x410   : > { %1640 = vmatprep.subr.mxu0 %v3661_v13 }
 0x411   : > { %1641 = vmatpush2.msra.mxu0 %v3662_v47 }
 0x412   : > { %1642 = vmatprep.subr.mxu0 %v3663_v16 }
 0x413   : > { %1643 = vmatpush2.msra.mxu0 %v3664_v17 }
 0x414   : > { %1644 = vmatprep.subr.mxu0 %v3665_v24 }
 0x415   : > { %1645 = vmatpush2.msra.mxu0 %v3666_v33 }
 0x416   : > { %1646 = vmatprep.subr.mxu0 %v3667_v50 }
 0x417   : > { %1647 = vmatpush2.msra.mxu0 %v3668_v49 }
 0x418   : > { %1648 = vmatprep.subr.mxu0 %v3669_v28 }
 0x419   : > { %1649 = vmatpush2.msra.mxu0 %v3670_v37 }
 0x450   : > { %v1017_v53 = vpop.f32.mrf.mxu0 }
 0x451   : > { %v1018_v54 = vadd.f32 1e-05, %v1017_v53  ;;  %v3254_v53 = vld [vmem:[#allocation2 + $0x20] sm:$0xff] }
 0x452   : > { %v1019_v55 = vpop.f32.mrf.mxu0 }
 0x453   : > { %v1020_v56 = vadd.f32 1e-05, %v1019_v55  ;;  %2059 = vrsqrt.f32 %v1018_v54  ;;  %v3257_v54 = vld [vmem:[#allocation2 + $0x18] sm:$0xff]  ;;  %v3260_v55 = vld [vmem:[#allocation2 + $0x10] sm:$0xff] }
 0x455   : > { %2061 = vrsqrt.f32 %v1020_v56  ;;  %v3263_v56 = vld [vmem:[#allocation2 + $0x8] sm:$0xff] }
 0x45a   : > { %v3287_v0 = vpop.f32.mrf.mxu0 }
 0x45b   : > { %3678 = vst [vmem:[#allocation14_spill] sm:$0xff] %v3287_v0  ;;  %v3309_v0 = vld [vmem:[#allocation2 + $0x198] sm:$0xff] }
 0x45c   : > { %3683 = vst [vmem:[#allocation19_spill] sm:$0xff] %v3309_v0 }
 0x460   : > { %v2060_v60 = vpop.eup %2059 }
 0x462   : > { %v2062_v63 = vpop.eup %2061 }
 0x463   : > { %v1026_v1 = vcombine.low %v2060_v60, %v2062_v63  ;;  %v3275_v60 = vld [vmem:[#allocation2 + $0x1e8] sm:$0xff]  ;;  %v3284_v63 = vld [vmem:[#allocation2 + $0x1d0] sm:$0xff] }
 0x465   : > { %v1028_v5 = vmul.f32 %v1026_v1, %v3674_v4  ;;  %v3289_v1 = vld [vmem:[#allocation2 + $0x1c8] sm:$0xff]  ;;  %v3295_v4 = vld [vmem:[#allocation2 + $0x1b8] sm:$0xff] }
 0x466   : > { %3679 = vst [vmem:[#allocation15_spill] sm:$0xff] %v3295_v4 }
 0x467   : > { %v1041_v7 = vmul.f32 %v3161_v2, %v1028_v5  ;;  %v3298_v5 = vld [vmem:[#allocation2 + $0x1b0] sm:$0xff] }
 0x468   : > { %3680 = vst [vmem:[#allocation16_spill] sm:$0xff] %v3298_v5  ;;  %v3312_v2 = vld [vmem:[#allocation2 + $0x190] sm:$0xff] }
 0x469   : > { %v3168_v8 = vadd.f32 %v3164_v6, %v1041_v7  ;;  %v3301_v7 = vpop.f32.mrf.mxu0 }
 0x46a   : > { %3681 = vst [vmem:[#allocation17_spill] sm:$0xff] %v3301_v7 }
 0x46b   : > { %3676 = vst [vmem:[#allocation12_spill] sm:$0xff] %v3168_v8  ;;  %v3172_v9 = vcombine.high %v3168_v8, %v3168_v8 }
 0x46d   : > { %3677 = vst [vmem:[#allocation13_spill] sm:$0xff] %v3172_v9  ;;  %1122 = vmatprep.mubr.f32.mxu1 %v3172_v9  ;;  %v3303_v9 = vld [vmem:[#allocation2 + $0x1a8] sm:$0xff] }
 0x46e   : > { %1123 = vmatmul.mubr.f32.vlgmr.msra.gmra.mxu1 %v3168_v8  ;;  %3682 = vst [vmem:[#allocation18_spill] sm:$0xff] %v3303_v9  ;;  %v3306_v8 = vld [vmem:[#allocation2 + $0x1a0] sm:$0xff] }
 0x46f   : > { %1504 = vmatpush1.msra.mxu1 %v3176_v10 }
 0x470   : > { %1505 = vmatprep.subr.mxu1 %v3179_v11 }
 0x471   : > { %1506 = vmatpush1.msra.mxu1 %v3182_v12 }
 0x472   : > { %1507 = vmatprep.subr.mxu1 %v3185_v42 }
 0x473   : > { %1508 = vmatpush1.msra.mxu1 %v3188_v34 }
 0x474   : > { %1509 = vmatprep.subr.mxu1 %v3191_v36 }
 0x475   : > { %1510 = vmatpush1.msra.mxu1 %v3194_v46 }
 0x476   : > { %1511 = vmatprep.subr.mxu1 %v3197_v15 }
 0x477   : > { %1512 = vmatpush1.msra.mxu1 %v3200_v41 }
 0x478   : > { %1513 = vmatprep.subr.mxu1 %v3203_v51 }
 0x479   : > { %1514 = vmatpush1.msra.mxu1 %v3206_v39 }
 0x47a   : > { %1515 = vmatprep.subr.mxu1 %v3209_v44 }
 0x47b   : > { %1516 = vmatpush1.msra.mxu1 %v3212_v38 }
 0x47c   : > { %1517 = vmatprep.subr.mxu1 %v3215_v35 }
 0x47d   : > { %1518 = vmatpush1.msra.mxu1 %v3218_v31 }
 0x47e   : > { %1519 = vmatprep.subr.mxu1 %v3221_v20 }
 0x47f   : > { %1520 = vmatpush1.msra.mxu1 %v3224_v32 }
 0x480   : > { %1521 = vmatprep.subr.mxu1 %v3227_v27 }
 0x481   : > { %1522 = vmatpush1.msra.mxu1 %v3230_v19 }
 0x482   : > { %1523 = vmatprep.subr.mxu1 %v3233_v21 }
 0x483   : > { %1524 = vmatpush1.msra.mxu1 %v3236_v29 }
 0x484   : > { %1525 = vmatprep.subr.mxu1 %v3239_v25 }
 0x485   : > { %1526 = vmatpush1.msra.mxu1 %v3242_v26 }
 0x486   : > { %1527 = vmatprep.subr.mxu1 %v3245_v23 }
 0x487   : > { %1528 = vmatpush1.msra.mxu1 %v3248_v30 }
 0x488   : > { %1529 = vmatprep.subr.mxu1 %v3251_v48 }
 0x489   : > { %1530 = vmatpush1.msra.mxu1 %v3254_v53 }
 0x48a   : > { %1531 = vmatprep.subr.mxu1 %v3257_v54 }
 0x48b   : > { %1532 = vmatpush1.msra.mxu1 %v3260_v55 }
 0x48c   : > { %1533 = vmatprep.subr.mxu1 %v3263_v56 }
 0x48d   : > { %1534 = vmatpush1.msra.mxu1 %v3266_v57 }
 0x48e   : > { %1535 = vmatprep.subr.mxu1 %v3269_v58 }
 0x48f   : > { %1536 = vmatpush2.msra.mxu1 %v3272_v59 }
 0x490   : > { %1537 = vmatprep.subr.mxu1 %v3275_v60 }
 0x491   : > { %1538 = vmatpush2.msra.mxu1 %v3278_v61 }
 0x492   : > { %1539 = vmatprep.subr.mxu1 %v3281_v62 }
 0x493   : > { %1540 = vmatpush2.msra.mxu1 %v3284_v63 }
 0x494   : > { %1541 = vmatprep.subr.mxu1 %v3289_v1 }
 0x495   : > { %1542 = vmatpush2.msra.mxu1 %v3292_v3 }
 0x496   : > { %1543 = vmatprep.subr.mxu1 %v3295_v4  ;;  %v3318_v4 = vld [vmem:[#allocation2 + $0x180] sm:$0xff] }
 0x497   : > { %1544 = vmatpush2.msra.mxu1 %v3298_v5  ;;  %v3315_v5 = vld [vmem:[#allocation2 + $0x188] sm:$0xff]  ;;  %3685 = vst [vmem:[#allocation21_spill] sm:$0xff] %v3318_v4 }
 0x498   : > { %1545 = vmatprep.subr.mxu1 %v3303_v9  ;;  %3684 = vst [vmem:[#allocation20_spill] sm:$0xff] %v3315_v5 }
 0x499   : > { %1546 = vmatpush2.msra.mxu1 %v3306_v8 }
 0x49a   : > { %1547 = vmatprep.subr.mxu1 %v3309_v0  ;;  %v1489_v6 = vpop.f32.mrf.mxu0 }
 0x49b   : > { %1548 = vmatpush2.msra.mxu1 %v3312_v2 }
 0x49c   : > { %1549 = vmatprep.subr.mxu1 %v3315_v5  ;;  %v1491_v7 = vpop.f32.mrf.mxu0 }
 0x49d   : > { %1550 = vmatpush2.msra.mxu1 %v3318_v4  ;;  %v1496_v9 = vcombine.low %v1489_v6, %v1491_v7  ;;  %v2152_v6 = vld [vmem:[#allocation2 + $0x178] sm:$0xff] }
 0x49e   : > { %1551 = vmatprep.subr.mxu1 %v3655_v22  ;;  %v2151_v22 = vld [vmem:[#allocation2 + $0xf8] sm:$0xff] }
 0x49f   : > { %1552 = vmatpush2.msra.mxu1 %v3656_v18  ;;  %v3324_v0 = vsub.f32 %v3020_v43, %v1496_v9  ;;  %v3686_v18 = vld [vmem:[#allocation15_spill] sm:$0xff]  ;;  %v2153_v9 = vld [vmem:[#allocation2 + $0x170] sm:$0xff] }
 0x4a0   : > { %1553 = vmatprep.subr.mxu1 %v3657_v45  ;;  %v3687_v45 = vld [vmem:[#allocation16_spill] sm:$0xff] }
 0x4a1   : > { %1554 = vmatpush2.msra.mxu1 %v3658_v40  ;;  %v1499_v5 = vmul.f32 %v3324_v0, %v3324_v0  ;;  %v3688_v40 = vld [vmem:[#allocation18_spill] sm:$0xff] }
 0x4a2   : > { %1555 = vmatprep.subr.mxu1 %v3671_v52  ;;  %v3691_v52 = vld [vmem:[#allocation21_spill] sm:$0xff] }
 0x4a3   : > { %1556 = vmatpush2.msra.mxu1 %v3660_v14  ;;  %v1501_v4 = vcombine.high %v1499_v5, %v1499_v5  ;;  %v3689_v14 = vld [vmem:[#allocation19_spill] sm:$0xff] }
 0x4a4   : > { %1557 = vmatprep.subr.mxu1 %v3661_v13  ;;  %v3690_v13 = vld [vmem:[#allocation20_spill] sm:$0xff] }
 0x4a5   : > { %1558 = vmatpush2.msra.mxu1 %v3662_v47  ;;  %1567 = vmatprep.mubr.f32.mxu1 %v1501_v4 }
 0x4a6   : > { %1559 = vmatprep.subr.mxu1 %v3663_v16 }
 0x4a7   : > { %1560 = vmatpush2.msra.mxu1 %v3664_v17 }
 0x4a8   : > { %1561 = vmatprep.subr.mxu1 %v3665_v24 }
 0x4a9   : > { %1562 = vmatpush2.msra.mxu1 %v3666_v33 }
 0x4aa   : > { %1563 = vmatprep.subr.mxu1 %v3667_v50 }
 0x4ab   : > { %1564 = vmatpush2.msra.mxu1 %v3668_v49 }
 0x4ac   : > { %1565 = vmatprep.subr.mxu1 %v3669_v28 }
 0x4ad   : > { %1566 = vmatpush2.msra.mxu1 %v3670_v37 }
 0x4ae   : > { %1568 = vmatmul.mubr.f32.vlgmr.msra.gmra.mxu1 %v1499_v5  ;;  %1682 = vmatprep.subr.mxu1 %v2151_v22 }
 0x4af   : > { %1683 = vmatpush1.msra.mxu1 %v3176_v10  ;;  %v2154_v10 = vld [vmem:[#allocation2 + $0x168] sm:$0xff] }
 0x4b0   : > { %1684 = vmatprep.subr.mxu1 %v3179_v11  ;;  %v2155_v11 = vld [vmem:[#allocation2 + $0x160] sm:$0xff] }
 0x4b1   : > { %1685 = vmatpush1.msra.mxu1 %v3182_v12  ;;  %v2156_v12 = vld [vmem:[#allocation2 + $0x158] sm:$0xff] }
 0x4b2   : > { %1686 = vmatprep.subr.mxu1 %v3185_v42  ;;  %v2157_v42 = vld [vmem:[#allocation2 + $0x150] sm:$0xff] }
 0x4b3   : > { %1687 = vmatpush1.msra.mxu1 %v3188_v34 }
 0x4b4   : > { %1688 = vmatprep.subr.mxu1 %v3191_v36 }
 0x4b5   : > { %1689 = vmatpush1.msra.mxu1 %v3194_v46 }
 0x4b6   : > { %1690 = vmatprep.subr.mxu1 %v3197_v15 }
 0x4b7   : > { %1691 = vmatpush1.msra.mxu1 %v3200_v41 }
 0x4b8   : > { %1692 = vmatprep.subr.mxu1 %v3203_v51 }
 0x4b9   : > { %1693 = vmatpush1.msra.mxu1 %v3206_v39 }
 0x4ba   : > { %1694 = vmatprep.subr.mxu1 %v3209_v44 }
 0x4bb   : > { %1695 = vmatpush1.msra.mxu1 %v3212_v38 }
 0x4bc   : > { %1696 = vmatprep.subr.mxu1 %v3215_v35 }
 0x4bd   : > { %1697 = vmatpush1.msra.mxu1 %v3218_v31 }
 0x4be   : > { %1698 = vmatprep.subr.mxu1 %v3221_v20 }
 0x4bf   : > { %1699 = vmatpush1.msra.mxu1 %v3224_v32 }
 0x4c0   : > { %1700 = vmatprep.subr.mxu1 %v3227_v27 }
 0x4c1   : > { %1701 = vmatpush1.msra.mxu1 %v3230_v19 }
 0x4c2   : > { %1702 = vmatprep.subr.mxu1 %v3233_v21 }
 0x4c3   : > { %1703 = vmatpush1.msra.mxu1 %v3236_v29 }
 0x4c4   : > { %1704 = vmatprep.subr.mxu1 %v3239_v25 }
 0x4c5   : > { %1705 = vmatpush1.msra.mxu1 %v3242_v26 }
 0x4c6   : > { %1706 = vmatprep.subr.mxu1 %v3245_v23 }
 0x4c7   : > { %1707 = vmatpush1.msra.mxu1 %v3248_v30 }
 0x4c8   : > { %1708 = vmatprep.subr.mxu1 %v3251_v48 }
 0x4c9   : > { %1709 = vmatpush1.msra.mxu1 %v3254_v53 }
 0x4ca   : > { %1710 = vmatprep.subr.mxu1 %v3257_v54 }
 0x4cb   : > { %1711 = vmatpush1.msra.mxu1 %v3260_v55 }
 0x4cc   : > { %1712 = vmatprep.subr.mxu1 %v3263_v56 }
 0x4cd   : > { %1713 = vmatpush1.msra.mxu1 %v3266_v57 }
 0x4ce   : > { %1714 = vmatprep.subr.mxu1 %v3269_v58 }
 0x4cf   : > { %1715 = vmatpush2.msra.mxu1 %v3272_v59 }
 0x4d0   : > { %1716 = vmatprep.subr.mxu1 %v3275_v60 }
 0x4d1   : > { %1717 = vmatpush2.msra.mxu1 %v3278_v61 }
 0x4d2   : > { %1718 = vmatprep.subr.mxu1 %v3281_v62 }
 0x4d3   : > { %1719 = vmatpush2.msra.mxu1 %v3284_v63 }
 0x4d4   : > { %1720 = vmatprep.subr.mxu1 %v3289_v1 }
 0x4d5   : > { %1721 = vmatpush2.msra.mxu1 %v3292_v3 }
 0x4d6   : > { %1722 = vmatprep.subr.mxu1 %v3686_v18 }
 0x4d7   : > { %1723 = vmatpush2.msra.mxu1 %v3687_v45 }
 0x4d8   : > { %1724 = vmatprep.subr.mxu1 %v3688_v40 }
 0x4d9   : > { %1725 = vmatpush2.msra.mxu1 %v3306_v8  ;;  %v2158_v8 = vld [vmem:[#allocation2 + $0x148] sm:$0xff] }
 0x4da   : > { %1726 = vmatprep.subr.mxu1 %v3689_v14 }
 0x4db   : > { %1727 = vmatpush2.msra.mxu1 %v3312_v2 }
 0x4dc   : > { %1728 = vmatprep.subr.mxu1 %v3690_v13 }
 0x4dd   : > { %1729 = vmatpush2.msra.mxu1 %v3691_v52 }
 0x4de   : > { %1730 = vmatprep.subr.mxu1 %v2152_v6 }
 0x4df   : > { %1731 = vmatpush2.msra.mxu1 %v2153_v9 }
 0x4e0   : > { %1732 = vmatprep.subr.mxu1 %v2154_v10 }
 0x4e1   : > { %1733 = vmatpush2.msra.mxu1 %v2155_v11 }
 0x4e2   : > { %1734 = vmatprep.subr.mxu1 %v2156_v12 }
 0x4e3   : > { %1735 = vmatpush2.msra.mxu1 %v2157_v42  ;;  %v1340_v42 = vpop.permute.xlu1 %1339 }
 0x4e4   : > { %1736 = vmatprep.subr.mxu1 %v2158_v8 }
 0x4e5   : > { %1737 = vmatpush2.msra.mxu1 %v3662_v47 }
 0x4e6   : > { %1738 = vmatprep.subr.mxu1 %v3663_v16 }
 0x4e7   : > { %1739 = vmatpush2.msra.mxu1 %v3664_v17 }
 0x4e8   : > { %1740 = vmatprep.subr.mxu1 %v3665_v24 }
 0x4e9   : > { %1741 = vmatpush2.msra.mxu1 %v3666_v33 }
 0x4ea   : > { %1742 = vmatprep.subr.mxu1 %v3667_v50  ;;  %v3692_v50 = vld [vmem:[#allocation49_spill] sm:$0xff] }
 0x4eb   : > { %1743 = vmatpush2.msra.mxu1 %v3668_v49  ;;  %v3693_v49 = vld [vmem:[#allocation10_spill] sm:$0xff] }
 0x4ec   : > { %1744 = vmatprep.subr.mxu1 %v3669_v28 }
 0x4ed   : > { %1745 = vmatpush2.msra.mxu1 %v3670_v37 }
 0x52e   : > { %v1124_v2 = vpop.f32.mrf.mxu1 }
 0x52f   : > { %v1129_v37 = vsel %vm632_vm1, %v1124_v2, -inf }
 0x530   : > { %v1126_v34 = vpop.f32.mrf.mxu1  ;;  %v1130_v44 = vrot.slane %v1129_v37, 4 }
 0x531   : > { %v1136_v39 = vsel %vm632_vm1, %v1126_v34, -inf }
 0x532   : > { %v1137_v38 = vrot.slane %v1136_v39, 4  ;;  %v1131_v35 = vmax.f32 %v1129_v37, %v1130_v44 }
 0x534   : > { %v1138_v31 = vmax.f32 %v1136_v39, %v1137_v38  ;;  %v1132_v20 = vrot.slane %v1131_v35, 2 }
 0x536   : > { %v1139_v32 = vrot.slane %v1138_v31, 2  ;;  %v1133_v27 = vmax.f32 %v1131_v35, %v1132_v20 }
 0x538   : > { %v1140_v19 = vmax.f32 %v1138_v31, %v1139_v32  ;;  %v1134_v21 = vrot.slane %v1133_v27, 1 }
 0x53a   : > { %v1141_v29 = vrot.slane %v1140_v19, 1  ;;  %v1135_v25 = vmax.f32 %v1133_v27, %v1134_v21 }
 0x53c   : > { %v1142_v26 = vmax.f32 %v1140_v19, %v1141_v29  ;;  %v1143_v23 = vsub.f32 %v1124_v2, %v1135_v25 }
 0x53e   : > { %v1144_v30 = vsub.f32 %v1126_v34, %v1142_v26  ;;  %v1145_v48 = vmul.f32 1.442695, %v1143_v23 }
 0x540   : > { %v1147_v53 = vmul.f32 1.442695, %v1144_v30 }
 0x56e   : > { %v1569_v36 = vpop.f32.mrf.mxu1 }
 0x56f   : > { %v1570_v47 = vadd.f32 1e-05, %v1569_v36  ;;  %v3694_v36 = vld [vmem:[#allocation14_spill] sm:$0xff] }
 0x570   : > { %v1571_v46 = vpop.f32.mrf.mxu1 }
 0x571   : > { %v1572_v16 = vadd.f32 1e-05, %v1571_v46  ;;  %2063 = vrsqrt.f32 %v1570_v47  ;;  %v1419_v47 = vadd.f32 %v3694_v36, %v1340_v42 }
 0x573   : > { %2065 = vrsqrt.f32 %v1572_v16 }
 0x574   : > { %2067 = vpow2.f32 %v1145_v48 }
 0x575   : > { %2069 = vpow2.f32 %v1147_v53 }
 0x57e   : > { %v2064_v17 = vpop.eup %2063 }
 0x580   : > { %v2066_v24 = vpop.eup %2065 }
 0x581   : > { %v1578_v15 = vcombine.low %v2064_v17, %v2066_v24  ;;  %v2068_v54 = vpop.eup %2067  ;;  %v3695_v24 = vld [vmem:[#allocation17_spill] sm:$0xff] }
 0x582   : > { %v2070_v55 = vpop.eup %2069  ;;  %v1149_v56 = vsel %vm632_vm1, %v2068_v54, 0.0 }
 0x583   : > { %v1580_v33 = vmul.f32 %v1578_v15, %v3324_v0  ;;  %v1156_v57 = vsel %vm632_vm1, %v2070_v55, 0.0  ;;  %v1150_v59 = vrot.slane %v1149_v56, 4  ;;  %v1421_v15 = vadd.f32 %v3695_v24, %v1340_v42 }
 0x584   : > { %v1157_v60 = vrot.slane %v1156_v57, 4 }
 0x585   : > { %v1581_v41 = vmul.f32 %v1580_v33, %v3692_v50  ;;  %v1151_v61 = vadd.f32 %v1150_v59, %v1149_v56 }
 0x586   : > { %v1158_v62 = vadd.f32 %v1157_v60, %v1156_v57 }
 0x587   : > { %v1582_v51 = vadd.f32 %v1581_v41, %v3693_v49  ;;  %v1152_v1 = vrot.slane %v1151_v61, 2 }
 0x588   : > { %v1159_v5 = vrot.slane %v1158_v62, 2 }
 0x589   : > { %v1584_v28 = vcombine.high %v1582_v51, %v1582_v51  ;;  %v1936_v58 = vmul.f32 -1.442695, %v1582_v51  ;;  %v1153_v7 = vadd.f32 %v1152_v1, %v1151_v61 }
 0x58a   : > { %v1160_v22 = vadd.f32 %v1159_v5, %v1158_v62 }
 0x58b   : > { %1650 = vmatprep.mubr.f32.mxu0 %v1584_v28  ;;  %2071 = vpow2.f32 %v1936_v58  ;;  %v1154_v45 = vrot.slane %v1153_v7, 1 }
 0x58c   : > { %1651 = vmatmul.mubr.f32.vlgmr.msra.gmra.mxu0 %v1582_v51  ;;  %v1161_v40 = vrot.slane %v1160_v22, 1 }
 0x58d   : > { %v1155_v13 = vadd.f32 %v1154_v45, %v1153_v7 }
 0x58e   : > { %v1162_v6 = vadd.f32 %v1161_v40, %v1160_v22 }
 0x598   : > { %v2072_v18 = vpop.eup %2071 }
 0x599   : > { %v1672_v14 = vadd.f32 1.0, %v2072_v18 }
 0x64c   : > { %v1652_v63 = vpop.f32.mrf.mxu0 }
 0x64d   : > { %v1934_v0 = vmul.f32 -1.442695, %v1652_v63 }
 0x64e   : > { %v1654_v3 = vpop.f32.mrf.mxu0 }
 0x64f   : > { %2073 = vpow2.f32 %v1934_v0  ;;  %v1935_v4 = vmul.f32 -1.442695, %v1654_v3 }
 0x651   : > { %2075 = vpow2.f32 %v1935_v4 }
 0x652   : > { %2077 = vrcp.f32 %v1672_v14 }
 0x653   : > { %2079 = vrcp.f32 %v1155_v13 }
 0x65c   : > { %v2074_v52 = vpop.eup %2073 }
 0x65d   : > { %v1663_v9 = vadd.f32 1.0, %v2074_v52  ;;  %v3696_v52 = vld [vmem:[#allocation12_spill] sm:$0xff] }
 0x65e   : > { %v2076_v10 = vpop.eup %2075 }
 0x65f   : > { %2081 = vrcp.f32 %v1663_v9  ;;  %v1664_v11 = vadd.f32 1.0, %v2076_v10  ;;  %v2078_v12 = vpop.eup %2077 }
 0x660   : > { %2083 = vrcp.f32 %v1162_v6  ;;  %v2080_v8 = vpop.eup %2079  ;;  %v1676_v46 = vcombine.high %v2078_v12, %v2078_v12 }
 0x661   : > { %2085 = vrcp.f32 %v1664_v11  ;;  %v1164_v50 = vmul.f32 %v2080_v8, %v2068_v54  ;;  %v3697_v11 = vld [vmem:[#allocation13_spill] sm:$0xff] }
 0x66c   : > { %v2082_v2 = vpop.eup %2081 }
 0x66d   : > { %v2084_v34 = vpop.eup %2083  ;;  %v1678_v16 = vmul.f32 %v2082_v2, %v2078_v12 }
 0x66e   : > { %v2086_v17 = vpop.eup %2085  ;;  %v1166_v49 = vmul.f32 %v2084_v34, %v2070_v55 }
 0x66f   : > { %v1679_v33 = vmul.f32 %v2086_v17, %v1676_v46  ;;  %v1680_v41 = vadd.f32 %v1678_v16, %v1419_v47 }
 0x671   : > { %v1681_v51 = vadd.f32 %v1679_v33, %v1421_v15  ;;  %v1791_v28 = vmul.f32 %v1680_v41, %v1164_v50 }
 0x673   : > { %1746 = vmatprep.mubr.f32.mxu1 %v1681_v51  ;;  %v1792_v37 = vmul.f32 %v1681_v51, %v1166_v49 }
 0x674   : > { %1747 = vmatmul.mubr.f32.vlgmr.msra.gmra.mxu1 %v1680_v41 }
 0x734   : > { %v1748_v39 = vpop.f32.mrf.mxu1 }
 0x735   : > { %v1753_v44 = vsel %vm632_vm1, %v1748_v39, -inf }
 0x736   : > { %v1754_v38 = vrot.slane %v1753_v44, 4  ;;  %v1750_v35 = vpop.f32.mrf.mxu1 }
 0x737   : > { %v1760_v31 = vsel %vm632_vm1, %v1750_v35, -inf }
 0x738   : > { %v1755_v20 = vmax.f32 %v1753_v44, %v1754_v38  ;;  %v1761_v32 = vrot.slane %v1760_v31, 4 }
 0x73a   : > { %v1756_v27 = vrot.slane %v1755_v20, 2  ;;  %v1762_v19 = vmax.f32 %v1760_v31, %v1761_v32 }
 0x73c   : > { %v1757_v21 = vmax.f32 %v1755_v20, %v1756_v27  ;;  %v1763_v29 = vrot.slane %v1762_v19, 2 }
 0x73e   : > { %v1758_v25 = vrot.slane %v1757_v21, 1  ;;  %v1764_v26 = vmax.f32 %v1762_v19, %v1763_v29 }
 0x740   : > { %v1759_v23 = vmax.f32 %v1757_v21, %v1758_v25  ;;  %v1765_v30 = vrot.slane %v1764_v26, 1 }
 0x742   : > { %v1767_v48 = vsub.f32 %v1748_v39, %v1759_v23  ;;  %v1766_v53 = vmax.f32 %v1764_v26, %v1765_v30 }
 0x744   : > { %v1769_v54 = vmul.f32 1.442695, %v1767_v48  ;;  %v1768_v55 = vsub.f32 %v1750_v35, %v1766_v53 }
 0x746   : > { %2087 = vpow2.f32 %v1769_v54  ;;  %v1771_v56 = vmul.f32 1.442695, %v1768_v55 }
 0x748   : > { %2089 = vpow2.f32 %v1771_v56 }
 0x753   : > { %v2088_v57 = vpop.eup %2087 }
 0x754   : > { %v1773_v58 = vsel %vm632_vm1, %v2088_v57, 0.0 }
 0x755   : > { %v2090_v59 = vpop.eup %2089  ;;  %v1774_v60 = vrot.slane %v1773_v58, 4 }
 0x756   : > { %v1780_v61 = vsel %vm632_vm1, %v2090_v59, 0.0 }
 0x757   : > { %v1775_v62 = vadd.f32 %v1774_v60, %v1773_v58  ;;  %v1781_v63 = vrot.slane %v1780_v61, 4 }
 0x759   : > { %v1776_v0 = vrot.slane %v1775_v62, 2  ;;  %v1782_v1 = vadd.f32 %v1781_v63, %v1780_v61 }
 0x75b   : > { %v1777_v3 = vadd.f32 %v1776_v0, %v1775_v62  ;;  %v1783_v4 = vrot.slane %v1782_v1, 2 }
 0x75d   : > { %v1778_v5 = vrot.slane %v1777_v3, 1  ;;  %v1784_v7 = vadd.f32 %v1783_v4, %v1782_v1 }
 0x75f   : > { %v1779_v22 = vadd.f32 %v1778_v5, %v1777_v3  ;;  %v1785_v18 = vrot.slane %v1784_v7, 1 }
 0x761   : > { %2091 = vrcp.f32 %v1779_v22  ;;  %v1786_v45 = vadd.f32 %v1785_v18, %v1784_v7 }
 0x763   : > { %2093 = vrcp.f32 %v1786_v45 }
 0x76e   : > { %v2092_v40 = vpop.eup %2091 }
 0x76f   : > { %v1788_v14 = vmul.f32 %v2092_v40, %v2088_v57 }
 0x770   : > { %v2094_v13 = vpop.eup %2093 }
 0x771   : > { %v1793_v6 = vmul.f32 %v1788_v14, %v3696_v52  ;;  %v1790_v9 = vmul.f32 %v2094_v13, %v2090_v59 }
 0x773   : > { %v1795_v10 = vadd.f32 %v1793_v6, %v1791_v28  ;;  %v1794_v12 = vmul.f32 %v1790_v9, %v3697_v11 }
 0x775   : > { %v1797_v42 = vsel %vm632_vm1, %v1795_v10, 0.0  ;;  %v1796_v8 = vadd.f32 %v1794_v12, %v1792_v37 }
 0x776   : > { %v1798_v2 = vrot.slane %v1797_v42, 4 }
 0x777   : > { %v1804_v34 = vsel %vm632_vm1, %v1796_v8, 0.0 }
 0x778   : > { %v1799_v36 = vadd.f32 %v1798_v2, %v1797_v42  ;;  %v1805_v47 = vrot.slane %v1804_v34, 4 }
 0x77a   : > { %v1800_v46 = vrot.slane %v1799_v36, 2  ;;  %v1806_v16 = vadd.f32 %v1805_v47, %v1804_v34 }
 0x77c   : > { %v1801_v17 = vadd.f32 %v1800_v46, %v1799_v36  ;;  %v1807_v24 = vrot.slane %v1806_v16, 2 }
 0x77e   : > { %v1802_v15 = vrot.slane %v1801_v17, 1  ;;  %v1808_v33 = vadd.f32 %v1807_v24, %v1806_v16 }
 0x780   : > { %v1803_v50 = vadd.f32 %v1802_v15, %v1801_v17  ;;  %v1809_v41 = vrot.slane %v1808_v33, 1 }
 0x782   : > { %v1937_v49 = vmul.f32 -1.442695, %v1803_v50  ;;  %v1810_v51 = vadd.f32 %v1809_v41, %v1808_v33 }
 0x784   : > { %2095 = vpow2.f32 %v1937_v49  ;;  %v1938_v28 = vmul.f32 -1.442695, %v1810_v51 }
 0x786   : > { %2097 = vpow2.f32 %v1938_v28 }
 0x791   : > { %v2096_v37 = vpop.eup %2095 }
 0x792   : > { %v1817_v39 = vadd.f32 1.0, %v2096_v37 }
 0x793   : > { %v2098_v44 = vpop.eup %2097 }
 0x794   : > { %v1818_v38 = vadd.f32 1.0, %v2098_v44  ;;  %2099 = vrcp.f32 %v1817_v39 }
 0x796   : > { %2101 = vrcp.f32 %v1818_v38 }
 0x7a1   : > { %v2100_v35 = vpop.eup %2099 }
 0x7a3   : > { %v2102_v31 = vpop.eup %2101 }
 0x7a4   : > { %v1825_v20 = vcombine.low %v2100_v35, %v2102_v31 }
 0x7a6   : > { %v1827_v32 = vmul.f32 %v3020_v43, %v1825_v20 }
 0x7a8   : > { %1828 = vst [vmem:[%s421_s17] sm:$0xff] %v1827_v32 }
 0x7a9   : > { %2198 = shalt.err (!%p2195_p0)
}
 0x7aa   : > { %s2199_s10 = scalar_lea.hbm %s1842_s19, 128  ;;  %s2203_s17 = scalar_lea.hbm %s3462_s12, 256 }
 0x7ab   : > { %p2200_p1 = scmp.ne.s32.totalorder %s1842_s19, %s2199_s10  ;;  %p2204_p4 = scmp.lt.s32.totalorder %s1842_s19, %s3462_s12 }
 0x7ac   : > { %p2205_p7 = scmp.lt.s32.totalorder %s2203_s17, %s2199_s10 }
 0x7ad   : > { %p2201_p2 = pnand %p2200_p1, %p2370_p5 }
 0x7ae   : > { %p2206_p8 = por %p2205_p7, %p2204_p4 }
 0x7af   : > { %p2202_p3 = pneg %p2201_p2 }
 0x7b1   : > { %p2207_p6 = pnand %p2206_p8, %p2202_p3 }
 0x7b3   : > { %2210 = shalt.err (!%p2207_p6)
}
 0x7b4   : > { %1992 = dma.vmem_to_hbm [thread:$0]  (%p2370_p5), %s1845_s28, 128, %s1842_s19, %s1830_s18  }
 0x7b5 PF: > { %p2004_p9 = scmp.ge.s32.totalorder %s2249_s24, 2  ;;  %s1856_s15 = sand.u32 1, %s2237_s21  }
 0x7b6   : > { %p3698_p10 = scmp.ne.s32.totalorder %s3565_s14, 0  ;;  %s1857_s20 = scalar_lea.sflag [#allocation4], %s1856_s15 }
 0x7b8   : > { %p1999_p11 = pnand %p2004_p9, %p3698_p10 }
 0x7ba   : > { %p2000_p12 = pneg %p1999_p11 }
 0x7bc   : > { %2232 = dma.done.wait (%p2000_p12), %s1857_s20, 128  }
 0x7bd   : > { %2234 = vsyncadd (%p2000_p12), %s1857_s20, 4294967168  ;;  %s3699_s26 = sld [smem:[#allocation8_spill]]  ;;  %p23_p13 = scmp.ge.s32.totalorder %s2357_s27, 4  }
 0x7be   : > { %s3700_s23 = sld [smem:[#allocation9_spill]]  ;;  %s3701_s21 = smov %s2241_s22 }
 0x7bf   : > { %s3703_s24 = smov %s2357_s27  ;;  %25 = sbr.rel (!%p23_p13) target bundleno = 6 (0x6), region = 108 }
 0x7c3   : > { %s3702_s22 = smov %s3699_s26 }
 0x7c4   :  { %1862 = vsyncpa [#allocation3], 1 }
 0x7c5   :  { %1864 = vsyncpa [#allocation3 + $0x1], 1 }
 0x7c6   :  { %1865 = vsyncpa [#allocation4], 1 }
 0x7c7   :  { %1867 = vsyncpa [#allocation4 + $0x1], 1 }

</bundles_post_ra>
